<compile_context>
chip_gen: v6e
topology: v6e:2x2x1
jax: 0.10.0
libtpu: 0.0.40
codegen_flags: <defaults>
</compile_context>

<pallas_src>
import functools

import jax
import jax.numpy as jnp
from jax.experimental import pallas as pl
from jax.experimental.pallas import tpu as pltpu


# ---------------------------------------------------------------------------
# Fused MBConv kernel.  One grid step processes Nb images whose spatial maps
# are concatenated along lanes; every intermediate stays in registers/VMEM.
# ---------------------------------------------------------------------------
def _mbconv_kernel(x_ref, masks_ref, *refs, has_expand, use_sel, k, W, pad):
    refs = list(refs)
    if has_expand:
        w_exp_ref, bn1_b_ref = refs.pop(0), refs.pop(0)
    w_dw_ref, bn2_b_ref = refs.pop(0), refs.pop(0)
    if use_sel:
        sel_ref = refs.pop(0)
    (w_se1_ref, b_se1_ref, w_se2_ref, b_se2_ref, pool_ref, gmat_ref,
     w_proj_ref, bn3_b_ref, o_ref) = refs

    x = x_ref[...]                        # (Cin, Lin) f32, Nb images along lanes
    Lin = x.shape[1]

    # ---- 1x1 expand (BN1 scale pre-folded into rows) + Swish --------------
    if has_expand:
        w_exp = w_exp_ref[...]            # (Chid, Cin)
        Cin = w_exp.shape[1]
        if Cin <= 32:
            # Tiny-K 1x1 conv: rank-1 VPU FMAs; the MXU would be <2% utilized.
            h = w_exp[:, 0:1] * x[0:1, :]
            for c in range(1, Cin):
                h = h + w_exp[:, c:c + 1] * x[c:c + 1, :]
        else:
            h = jnp.dot(w_exp.astype(jnp.bfloat16), x.astype(jnp.bfloat16),
                        preferred_element_type=jnp.float32)
        h = h + bn1_b_ref[...]
        h = h * jax.nn.sigmoid(h)         # Swish, f32 (v5e has no bf16 VPU/EUP)
    else:
        h = x
    Chid = h.shape[0]

    # ---- depthwise KxK at every stride-1 position --------------------------
    # No physical zero-padding and no padded scratch: each tap is one XLU
    # lane-roll of the single in-register copy of `h`, with a host-built 0/1
    # mask zeroing taps that fall off the image (or cross image segments).
    w_dw = w_dw_ref[...]                  # (Chid, k*k), BN2 scale pre-folded
    masks = masks_ref[...]                # (k*k, Lin) 0/1 border masks
    acc = jnp.zeros(h.shape, jnp.float32)
    for t in range(k * k):
        dy, dx = t // k - pad, t % k - pad
        off = dy * W + dx                 # lane offset of this tap
        src = h if off == 0 else pltpu.roll(h, (-off) % Lin, axis=1)
        acc = acc + (src * masks[t:t + 1, :]) * w_dw[:, t:t + 1]

    # ---- stride selection: exact 0/1 bf16 matmul on the otherwise-idle MXU -
    if use_sel:
        h_dw = jnp.dot(acc.astype(jnp.bfloat16), sel_ref[...],
                       preferred_element_type=jnp.float32)      # (Chid, Lout)
    else:
        h_dw = acc                        # stride 1: output is already lane-dense
    h_dw = h_dw + bn2_b_ref[...]
    h_dw = h_dw * jax.nn.sigmoid(h_dw)    # Swish

    # ---- Squeeze-Excitation, batched over the Nb images of this block ------
    # pool_mat holds 1/HoWo inside each image's lane segment -> per-image mean.
    pooled = jnp.dot(h_dw, pool_ref[...],
                     preferred_element_type=jnp.float32)        # (Chid, Nb)
    w_se1, w_se2 = w_se1_ref[...], w_se2_ref[...]               # (R,Chid),(Chid,R)
    R, Nb = w_se1.shape[0], pooled.shape[1]
    # Tiny matvecs stay on the VPU (rank-1 FMAs) instead of the MXU.
    if Chid <= 64:
        z = jnp.zeros((R, Nb), jnp.float32)
        for c in range(Chid):
            z = z + w_se1[:, c:c + 1] * pooled[c:c + 1, :]
    else:
        z = jnp.dot(w_se1, pooled, preferred_element_type=jnp.float32)
    z = z + b_se1_ref[...]
    z = z * jax.nn.sigmoid(z)                                   # (R, Nb) Swish
    if R <= 64:
        g = jnp.zeros((Chid, Nb), jnp.float32)
        for r in range(R):
            g = g + w_se2[:, r:r + 1] * z[r:r + 1, :]
    else:
        g = jnp.dot(w_se2, z, preferred_element_type=jnp.float32)
    g = jax.nn.sigmoid(g + b_se2_ref[...])                      # per-image gates
    gmat = gmat_ref[...]                                        # (Nb, Lout) 0/1
    gate = jnp.zeros(h_dw.shape, jnp.float32)
    for n in range(Nb):
        gate = gate + g[:, n:n + 1] * gmat[n:n + 1, :]
    h_se = h_dw * gate

    # ---- 1x1 project (BN3 scale folded into bf16 weights) + bias -----------
    y = jnp.dot(w_proj_ref[...], h_se.astype(jnp.bfloat16),
                preferred_element_type=jnp.float32)             # (Cout, Lout)
    o_ref[...] = (y + bn3_b_ref[...]).astype(o_ref.dtype)


# ---------------------------------------------------------------------------
# Wrapper: host-side layout prep + BN folding, single pallas_call.
# ---------------------------------------------------------------------------
def mbconv_forward(x_nchw, p, *, kernel_size, stride, expand_ratio):
    N, Cin, H, W = x_nchw.shape
    k = kernel_size
    # flat-lane depthwise + stride-sampling formulation assumes "same" padding
    assert k % 2 == 1, "kernel_size must be odd"
    pad = k // 2
    Ho = (H + 2 * pad - k) // stride + 1
    Wo = (W + 2 * pad - k) // stride + 1
    HW, HoWo = H * W, Ho * Wo
    Chid = p["w_dw"].shape[0]
    Cout = p["w_project"].shape[0]
    has_expand = expand_ratio != 1
    use_sel = stride != 1

    # Batch-block Nb images per grid step so the output block is >=128 lanes
    # (unmasked stores, full MXU columns).  On v7x with larger N, cap Nb at
    # N//2 so grid >= 2 keeps both TensorCores busy.
    Nb = max(1, min(N, -(-128 // HoWo)))
    while N % Nb:
        Nb -= 1
    G = N // Nb
    Lin, Lout = Nb * HW, Nb * HoWo

    f32, bf16 = jnp.float32, jnp.bfloat16

    # NCHW -> (Cin, N*HW): channels in sublanes, batched spatial in lanes.
    x_lanes = (x_nchw.astype(f32).reshape(N, Cin, HW)
               .transpose(1, 0, 2).reshape(Cin, N * HW))

    # 0/1 border/image-segment masks for the k*k stride-1 taps (host-built).
    lane = jnp.arange(Lin, dtype=jnp.int32)
    yy, xx = (lane % HW) // W, lane % W
    mask_rows = []
    for t in range(k * k):
        dy, dx = t // k - pad, t % k - pad
        mask_rows.append(((yy + dy >= 0) & (yy + dy < H) &
                          (xx + dx >= 0) & (xx + dx < W)).astype(f32))
    masks = jnp.stack(mask_rows, axis=0)                          # (k*k, Lin)

    # Fold BN scales into conv weights on the host; keep only biases in-kernel.
    w_dw_f = (p["bn2_scale"] * p["w_dw"]).astype(f32)             # (Chid, k*k)
    w_proj_f = (p["bn3_scale"] * p["w_project"]).astype(bf16)     # (Cout, Chid)

    weights = []
    if has_expand:
        weights += [(p["bn1_scale"] * p["w_expand"]).astype(f32), p["bn1_bias"]]
    weights += [w_dw_f, p["bn2_bias"]]
    if use_sel:
        # Exact 0/1 selection matrix: stride-1 lane -> strided output lane.
        # NOTE: O(HW*HoWo) memory/FLOPs -- fine here; for production spatial
        # sizes use a per-row strided formulation instead.
        J = jnp.arange(Lout, dtype=jnp.int32)
        n_img, j = J // HoWo, J % HoWo
        src = n_img * HW + (j // Wo) * stride * W + (j % Wo) * stride
        sel = (jnp.arange(Lin, dtype=jnp.int32)[:, None]
               == src[None, :]).astype(bf16)                      # (Lin, Lout)
        weights += [sel]
    # Per-image pooling / gate-broadcast matrices for the lane-batched block.
    img_of_lane = jnp.arange(Lout, dtype=jnp.int32) // HoWo
    seg01 = (img_of_lane[None, :]
             == jnp.arange(Nb, dtype=jnp.int32)[:, None]).astype(f32)   # (Nb, Lout)
    pool_mat = seg01.T / float(HoWo)                                     # (Lout, Nb)
    weights += [p["w_se1"], p["b_se1"], p["w_se2"], p["b_se2"],
                pool_mat, seg01, w_proj_f, p["bn3_bias"]]

    in_specs = [pl.BlockSpec((Cin, Lin), lambda g: (0, g)),
                pl.BlockSpec(masks.shape, lambda g: (0, 0))]
    in_specs += [pl.BlockSpec(w.shape, lambda g: (0, 0)) for w in weights]

    kernel = functools.partial(_mbconv_kernel, has_expand=has_expand,
                               use_sel=use_sel, k=k, W=W, pad=pad)

    out = pl.pallas_call(
        kernel,
        out_shape=jax.ShapeDtypeStruct((Cout, N * HoWo), f32),
        grid=(G,),
        in_specs=in_specs,
        out_specs=pl.BlockSpec((Cout, Lout), lambda g: (0, g)),
        compiler_params=pltpu.CompilerParams(
            dimension_semantics=("parallel",),
            vmem_limit_bytes=32 * 1024 * 1024),
    )(x_lanes, masks, *weights)

    # (Cout, N*HoWo) -> NCHW
    return out.reshape(Cout, N, Ho, Wo).transpose(1, 0, 2, 3)


# ---------------------------------------------------------------------------
# Pure-JAX reference (verification), NCHW throughout, un-folded BN.
# ---------------------------------------------------------------------------
def mbconv_reference(x_nchw, p, *, kernel_size, stride, expand_ratio):
    swish = lambda v: v * jax.nn.sigmoid(v)
    chan = lambda a: a.reshape(1, -1, 1, 1)
    x = x_nchw.astype(jnp.float32)

    if expand_ratio != 1:
        h = jnp.einsum("oc,nchw->nohw", p["w_expand"], x)
        h = swish(h * chan(p["bn1_scale"]) + chan(p["bn1_bias"]))
    else:
        h = x

    C = h.shape[1]
    k = kernel_size
    pad = k // 2
    w_dw = p["w_dw"].reshape(C, 1, k, k)
    h = jax.lax.conv_general_dilated(
        h, w_dw, (stride, stride), [(pad, pad), (pad, pad)],
        dimension_numbers=("NCHW", "OIHW", "NCHW"), feature_group_count=C)
    h = swish(h * chan(p["bn2_scale"]) + chan(p["bn2_bias"]))

    pooled = jnp.mean(h, axis=(2, 3), keepdims=True)
    z = jnp.einsum("rc,nchw->nrhw", p["w_se1"], pooled) + chan(p["b_se1"])
    z = swish(z)
    g = jnp.einsum("cr,nrhw->nchw", p["w_se2"], z) + chan(p["b_se2"])
    h = h * jax.nn.sigmoid(g)

    out = jnp.einsum("oc,nchw->nohw", p["w_project"], h)
    return out * chan(p["bn3_scale"]) + chan(p["bn3_bias"])


# ---------------------------------------------------------------------------
# Deterministic synthetic parameters (weights stored (Cout, Cin); BN stats).
# ---------------------------------------------------------------------------
def init_params(key, in_channels, out_channels, kernel_size, expand_ratio, se_ratio):
    hidden = in_channels * expand_ratio
    reduced = max(1, int(in_channels * se_ratio))
    keys = iter(jax.random.split(key, 24))

    def bn_fold(c):
        gamma = 1.0 + 0.1 * jax.random.normal(next(keys), (c, 1), jnp.float32)
        beta = 0.1 * jax.random.normal(next(keys), (c, 1), jnp.float32)
        mean = 0.1 * jax.random.normal(next(keys), (c, 1), jnp.float32)
        var = jnp.abs(jax.random.normal(next(keys), (c, 1), jnp.float32)) + 0.5
        scale = gamma / jnp.sqrt(var + 1e-5)
        return scale, beta - mean * scale

    p = {}
    p["w_expand"] = jax.random.normal(next(keys), (hidden, in_channels), jnp.float32) * 0.2
    p["bn1_scale"], p["bn1_bias"] = bn_fold(hidden)
    p["w_dw"] = jax.random.normal(next(keys), (hidden, kernel_size * kernel_size),
                                  jnp.float32) * 0.2
    p["bn2_scale"], p["bn2_bias"] = bn_fold(hidden)
    p["w_se1"] = jax.random.normal(next(keys), (reduced, hidden), jnp.float32) * 0.2
    p["b_se1"] = 0.05 * jax.random.normal(next(keys), (reduced, 1), jnp.float32)
    p["w_se2"] = jax.random.normal(next(keys), (hidden, reduced), jnp.float32) * 0.2
    p["b_se2"] = 0.05 * jax.random.normal(next(keys), (hidden, 1), jnp.float32)
    p["w_project"] = jax.random.normal(next(keys), (out_channels, hidden), jnp.float32) * 0.2
    p["bn3_scale"], p["bn3_bias"] = bn_fold(out_channels)
    return p


if __name__ == "__main__":
    # MBConv(in_channels=4, out_channels=8, kernel_size=3, stride=2,
    #        expand_ratio=4, se_ratio=0.25)
    in_channels, out_channels = 4, 8
    kernel_size, stride, expand_ratio, se_ratio = 3, 2, 4, 0.25

    key = jax.random.PRNGKey(0)
    kx_, kp_ = jax.random.split(key)
    x = jax.random.normal(kx_, (2, in_channels, 16, 16), jnp.float32)   # NCHW
    params = init_params(kp_, in_channels, out_channels, kernel_size,
                         expand_ratio, se_ratio)

    fwd = jax.jit(functools.partial(mbconv_forward, kernel_size=kernel_size,
                                    stride=stride, expand_ratio=expand_ratio))
    out = jax.block_until_ready(fwd(x, params))

    ref = jax.block_until_ready(
        mbconv_reference(x, params, kernel_size=kernel_size, stride=stride,
                         expand_ratio=expand_ratio))

    assert out.shape == ref.shape == (2, out_channels, 8, 8), out.shape
    # Tolerance loosened vs a pure-f32 pipeline: the sel and project matmuls
    # use bf16 MXU operands (f32 accumulate).
    max_err = float(jnp.max(jnp.abs(out - ref)))
    assert max_err < 2e-2, max_err
    print("KERNEL_OK")
</pallas_src>

<mosaic_0001>
module attributes {stable_mosaic.version = 11 : i64} {
  func.func @_mbconv_kernel(%arg0: i32, %arg1: memref<4x512xf32, #tpu.memory_space<vmem>>, %arg2: memref<9x512xf32, #tpu.memory_space<vmem>>, %arg3: memref<16x4xf32, #tpu.memory_space<vmem>>, %arg4: memref<16x1xf32, #tpu.memory_space<vmem>>, %arg5: memref<16x9xf32, #tpu.memory_space<vmem>>, %arg6: memref<16x1xf32, #tpu.memory_space<vmem>>, %arg7: memref<512x128xbf16, #tpu.memory_space<vmem>>, %arg8: memref<1x16xf32, #tpu.memory_space<vmem>>, %arg9: memref<1x1xf32, #tpu.memory_space<vmem>>, %arg10: memref<16x1xf32, #tpu.memory_space<vmem>>, %arg11: memref<16x1xf32, #tpu.memory_space<vmem>>, %arg12: memref<128x2xf32, #tpu.memory_space<vmem>>, %arg13: memref<2x128xf32, #tpu.memory_space<vmem>>, %arg14: memref<8x16xbf16, #tpu.memory_space<vmem>>, %arg15: memref<8x1xf32, #tpu.memory_space<vmem>>, %arg16: memref<8x128xf32, #tpu.memory_space<vmem>>) attributes {dimension_semantics = [#tpu.dimension_semantics<parallel>], iteration_bounds = array<i64: 1>, scalar_prefetch = 0 : i64, scratch_operands = 0 : i64, tpu.core_type = #tpu.core_type<tc>, window_params = [{transform_indices = @transform_0, window_bounds = array<i64: 4, 512>}, {pipeline_mode = #tpu.pipeline_mode<synchronous>, transform_indices = @transform_1, window_bounds = array<i64: 9, 512>}, {pipeline_mode = #tpu.pipeline_mode<synchronous>, transform_indices = @transform_2, window_bounds = array<i64: 16, 4>}, {pipeline_mode = #tpu.pipeline_mode<synchronous>, transform_indices = @transform_3, window_bounds = array<i64: 16, 1>}, {pipeline_mode = #tpu.pipeline_mode<synchronous>, transform_indices = @transform_4, window_bounds = array<i64: 16, 9>}, {pipeline_mode = #tpu.pipeline_mode<synchronous>, transform_indices = @transform_5, window_bounds = array<i64: 16, 1>}, {pipeline_mode = #tpu.pipeline_mode<synchronous>, transform_indices = @transform_6, window_bounds = array<i64: 512, 128>}, {pipeline_mode = #tpu.pipeline_mode<synchronous>, transform_indices = @transform_7, window_bounds = array<i64: 1, 16>}, {pipeline_mode = #tpu.pipeline_mode<synchronous>, transform_indices = @transform_8, window_bounds = array<i64: 1, 1>}, {pipeline_mode = #tpu.pipeline_mode<synchronous>, transform_indices = @transform_9, window_bounds = array<i64: 16, 1>}, {pipeline_mode = #tpu.pipeline_mode<synchronous>, transform_indices = @transform_10, window_bounds = array<i64: 16, 1>}, {pipeline_mode = #tpu.pipeline_mode<synchronous>, transform_indices = @transform_11, window_bounds = array<i64: 128, 2>}, {pipeline_mode = #tpu.pipeline_mode<synchronous>, transform_indices = @transform_12, window_bounds = array<i64: 2, 128>}, {pipeline_mode = #tpu.pipeline_mode<synchronous>, transform_indices = @transform_13, window_bounds = array<i64: 8, 16>}, {pipeline_mode = #tpu.pipeline_mode<synchronous>, transform_indices = @transform_14, window_bounds = array<i64: 8, 1>}, {transform_indices = @transform_15, window_bounds = array<i64: 8, 128>}]} {
    %c0 = arith.constant 0 : index
    %c0_0 = arith.constant 0 : index
    %0 = vector.load %arg1[%c0, %c0_0] : memref<4x512xf32, #tpu.memory_space<vmem>>, vector<4x512xf32>
    %c0_1 = arith.constant 0 : index
    %c0_2 = arith.constant 0 : index
    %1 = vector.load %arg3[%c0_1, %c0_2] : memref<16x4xf32, #tpu.memory_space<vmem>>, vector<16x4xf32>
    %2 = vector.extract_strided_slice %1 {offsets = [0, 0], sizes = [16, 1], strides = [1, 1]} : vector<16x4xf32> to vector<16x1xf32>
    %3 = vector.extract_strided_slice %0 {offsets = [0, 0], sizes = [1, 512], strides = [1, 1]} : vector<4x512xf32> to vector<1x512xf32>
    %4 = vector.broadcast %2 : vector<16x1xf32> to vector<16x512xf32>
    %5 = vector.broadcast %3 : vector<1x512xf32> to vector<16x512xf32>
    %6 = arith.mulf %4, %5 : vector<16x512xf32>
    %7 = vector.extract_strided_slice %1 {offsets = [0, 1], sizes = [16, 1], strides = [1, 1]} : vector<16x4xf32> to vector<16x1xf32>
    %8 = vector.extract_strided_slice %0 {offsets = [1, 0], sizes = [1, 512], strides = [1, 1]} : vector<4x512xf32> to vector<1x512xf32>
    %9 = vector.broadcast %7 : vector<16x1xf32> to vector<16x512xf32>
    %10 = vector.broadcast %8 : vector<1x512xf32> to vector<16x512xf32>
    %11 = arith.mulf %9, %10 : vector<16x512xf32>
    %12 = arith.addf %6, %11 : vector<16x512xf32>
    %13 = vector.extract_strided_slice %1 {offsets = [0, 2], sizes = [16, 1], strides = [1, 1]} : vector<16x4xf32> to vector<16x1xf32>
    %14 = vector.extract_strided_slice %0 {offsets = [2, 0], sizes = [1, 512], strides = [1, 1]} : vector<4x512xf32> to vector<1x512xf32>
    %15 = vector.broadcast %13 : vector<16x1xf32> to vector<16x512xf32>
    %16 = vector.broadcast %14 : vector<1x512xf32> to vector<16x512xf32>
    %17 = arith.mulf %15, %16 : vector<16x512xf32>
    %18 = arith.addf %12, %17 : vector<16x512xf32>
    %19 = vector.extract_strided_slice %1 {offsets = [0, 3], sizes = [16, 1], strides = [1, 1]} : vector<16x4xf32> to vector<16x1xf32>
    %20 = vector.extract_strided_slice %0 {offsets = [3, 0], sizes = [1, 512], strides = [1, 1]} : vector<4x512xf32> to vector<1x512xf32>
    %21 = vector.broadcast %19 : vector<16x1xf32> to vector<16x512xf32>
    %22 = vector.broadcast %20 : vector<1x512xf32> to vector<16x512xf32>
    %23 = arith.mulf %21, %22 : vector<16x512xf32>
    %24 = arith.addf %18, %23 : vector<16x512xf32>
    %c0_3 = arith.constant 0 : index
    %c0_4 = arith.constant 0 : index
    %25 = vector.load %arg4[%c0_3, %c0_4] : memref<16x1xf32, #tpu.memory_space<vmem>>, vector<16x1xf32>
    %26 = vector.broadcast %25 : vector<16x1xf32> to vector<16x512xf32>
    %27 = arith.addf %24, %26 : vector<16x512xf32>
    %28 = arith.negf %27 : vector<16x512xf32>
    %29 = math.exp %28 : vector<16x512xf32>
    %cst = arith.constant 1.000000e+00 : f32
    %30 = vector.broadcast %cst : f32 to vector<16x512xf32>
    %31 = arith.addf %30, %29 : vector<16x512xf32>
    %32 = arith.divf %30, %31 : vector<16x512xf32>
    %33 = arith.mulf %27, %32 : vector<16x512xf32>
    %c0_5 = arith.constant 0 : index
    %c0_6 = arith.constant 0 : index
    %34 = vector.load %arg5[%c0_5, %c0_6] : memref<16x9xf32, #tpu.memory_space<vmem>>, vector<16x9xf32>
    %c0_7 = arith.constant 0 : index
    %c0_8 = arith.constant 0 : index
    %35 = vector.load %arg2[%c0_7, %c0_8] : memref<9x512xf32, #tpu.memory_space<vmem>>, vector<9x512xf32>
    %cst_9 = arith.constant 0.000000e+00 : f32
    %36 = vector.broadcast %cst_9 : f32 to vector<16x512xf32>
    %c17_i32 = arith.constant 17 : i32
    %37 = tpu.dynamic_rotate %33 by %c17_i32 dim 1 : vector<16x512xf32>, i32 -> vector<16x512xf32>
    %38 = vector.extract_strided_slice %35 {offsets = [0, 0], sizes = [1, 512], strides = [1, 1]} : vector<9x512xf32> to vector<1x512xf32>
    %39 = vector.broadcast %38 : vector<1x512xf32> to vector<16x512xf32>
    %40 = arith.mulf %37, %39 : vector<16x512xf32>
    %41 = vector.extract_strided_slice %34 {offsets = [0, 0], sizes = [16, 1], strides = [1, 1]} : vector<16x9xf32> to vector<16x1xf32>
    %42 = vector.broadcast %41 : vector<16x1xf32> to vector<16x512xf32>
    %43 = arith.mulf %40, %42 : vector<16x512xf32>
    %44 = arith.addf %36, %43 : vector<16x512xf32>
    %c16_i32 = arith.constant 16 : i32
    %45 = tpu.dynamic_rotate %33 by %c16_i32 dim 1 : vector<16x512xf32>, i32 -> vector<16x512xf32>
    %46 = vector.extract_strided_slice %35 {offsets = [1, 0], sizes = [1, 512], strides = [1, 1]} : vector<9x512xf32> to vector<1x512xf32>
    %47 = vector.broadcast %46 : vector<1x512xf32> to vector<16x512xf32>
    %48 = arith.mulf %45, %47 : vector<16x512xf32>
    %49 = vector.extract_strided_slice %34 {offsets = [0, 1], sizes = [16, 1], strides = [1, 1]} : vector<16x9xf32> to vector<16x1xf32>
    %50 = vector.broadcast %49 : vector<16x1xf32> to vector<16x512xf32>
    %51 = arith.mulf %48, %50 : vector<16x512xf32>
    %52 = arith.addf %44, %51 : vector<16x512xf32>
    %c15_i32 = arith.constant 15 : i32
    %53 = tpu.dynamic_rotate %33 by %c15_i32 dim 1 : vector<16x512xf32>, i32 -> vector<16x512xf32>
    %54 = vector.extract_strided_slice %35 {offsets = [2, 0], sizes = [1, 512], strides = [1, 1]} : vector<9x512xf32> to vector<1x512xf32>
    %55 = vector.broadcast %54 : vector<1x512xf32> to vector<16x512xf32>
    %56 = arith.mulf %53, %55 : vector<16x512xf32>
    %57 = vector.extract_strided_slice %34 {offsets = [0, 2], sizes = [16, 1], strides = [1, 1]} : vector<16x9xf32> to vector<16x1xf32>
    %58 = vector.broadcast %57 : vector<16x1xf32> to vector<16x512xf32>
    %59 = arith.mulf %56, %58 : vector<16x512xf32>
    %60 = arith.addf %52, %59 : vector<16x512xf32>
    %c1_i32 = arith.constant 1 : i32
    %61 = tpu.dynamic_rotate %33 by %c1_i32 dim 1 : vector<16x512xf32>, i32 -> vector<16x512xf32>
    %62 = vector.extract_strided_slice %35 {offsets = [3, 0], sizes = [1, 512], strides = [1, 1]} : vector<9x512xf32> to vector<1x512xf32>
    %63 = vector.broadcast %62 : vector<1x512xf32> to vector<16x512xf32>
    %64 = arith.mulf %61, %63 : vector<16x512xf32>
    %65 = vector.extract_strided_slice %34 {offsets = [0, 3], sizes = [16, 1], strides = [1, 1]} : vector<16x9xf32> to vector<16x1xf32>
    %66 = vector.broadcast %65 : vector<16x1xf32> to vector<16x512xf32>
    %67 = arith.mulf %64, %66 : vector<16x512xf32>
    %68 = arith.addf %60, %67 : vector<16x512xf32>
    %69 = vector.extract_strided_slice %35 {offsets = [4, 0], sizes = [1, 512], strides = [1, 1]} : vector<9x512xf32> to vector<1x512xf32>
    %70 = vector.broadcast %69 : vector<1x512xf32> to vector<16x512xf32>
    %71 = arith.mulf %33, %70 : vector<16x512xf32>
    %72 = vector.extract_strided_slice %34 {offsets = [0, 4], sizes = [16, 1], strides = [1, 1]} : vector<16x9xf32> to vector<16x1xf32>
    %73 = vector.broadcast %72 : vector<16x1xf32> to vector<16x512xf32>
    %74 = arith.mulf %71, %73 : vector<16x512xf32>
    %75 = arith.addf %68, %74 : vector<16x512xf32>
    %c511_i32 = arith.constant 511 : i32
    %76 = tpu.dynamic_rotate %33 by %c511_i32 dim 1 : vector<16x512xf32>, i32 -> vector<16x512xf32>
    %77 = vector.extract_strided_slice %35 {offsets = [5, 0], sizes = [1, 512], strides = [1, 1]} : vector<9x512xf32> to vector<1x512xf32>
    %78 = vector.broadcast %77 : vector<1x512xf32> to vector<16x512xf32>
    %79 = arith.mulf %76, %78 : vector<16x512xf32>
    %80 = vector.extract_strided_slice %34 {offsets = [0, 5], sizes = [16, 1], strides = [1, 1]} : vector<16x9xf32> to vector<16x1xf32>
    %81 = vector.broadcast %80 : vector<16x1xf32> to vector<16x512xf32>
    %82 = arith.mulf %79, %81 : vector<16x512xf32>
    %83 = arith.addf %75, %82 : vector<16x512xf32>
    %c497_i32 = arith.constant 497 : i32
    %84 = tpu.dynamic_rotate %33 by %c497_i32 dim 1 : vector<16x512xf32>, i32 -> vector<16x512xf32>
    %85 = vector.extract_strided_slice %35 {offsets = [6, 0], sizes = [1, 512], strides = [1, 1]} : vector<9x512xf32> to vector<1x512xf32>
    %86 = vector.broadcast %85 : vector<1x512xf32> to vector<16x512xf32>
    %87 = arith.mulf %84, %86 : vector<16x512xf32>
    %88 = vector.extract_strided_slice %34 {offsets = [0, 6], sizes = [16, 1], strides = [1, 1]} : vector<16x9xf32> to vector<16x1xf32>
    %89 = vector.broadcast %88 : vector<16x1xf32> to vector<16x512xf32>
    %90 = arith.mulf %87, %89 : vector<16x512xf32>
    %91 = arith.addf %83, %90 : vector<16x512xf32>
    %c496_i32 = arith.constant 496 : i32
    %92 = tpu.dynamic_rotate %33 by %c496_i32 dim 1 : vector<16x512xf32>, i32 -> vector<16x512xf32>
    %93 = vector.extract_strided_slice %35 {offsets = [7, 0], sizes = [1, 512], strides = [1, 1]} : vector<9x512xf32> to vector<1x512xf32>
    %94 = vector.broadcast %93 : vector<1x512xf32> to vector<16x512xf32>
    %95 = arith.mulf %92, %94 : vector<16x512xf32>
    %96 = vector.extract_strided_slice %34 {offsets = [0, 7], sizes = [16, 1], strides = [1, 1]} : vector<16x9xf32> to vector<16x1xf32>
    %97 = vector.broadcast %96 : vector<16x1xf32> to vector<16x512xf32>
    %98 = arith.mulf %95, %97 : vector<16x512xf32>
    %99 = arith.addf %91, %98 : vector<16x512xf32>
    %c495_i32 = arith.constant 495 : i32
    %100 = tpu.dynamic_rotate %33 by %c495_i32 dim 1 : vector<16x512xf32>, i32 -> vector<16x512xf32>
    %101 = vector.extract_strided_slice %35 {offsets = [8, 0], sizes = [1, 512], strides = [1, 1]} : vector<9x512xf32> to vector<1x512xf32>
    %102 = vector.broadcast %101 : vector<1x512xf32> to vector<16x512xf32>
    %103 = arith.mulf %100, %102 : vector<16x512xf32>
    %104 = vector.extract_strided_slice %34 {offsets = [0, 8], sizes = [16, 1], strides = [1, 1]} : vector<16x9xf32> to vector<16x1xf32>
    %105 = vector.broadcast %104 : vector<16x1xf32> to vector<16x512xf32>
    %106 = arith.mulf %103, %105 : vector<16x512xf32>
    %107 = arith.addf %99, %106 : vector<16x512xf32>
    %108 = arith.truncf %107 : vector<16x512xf32> to vector<16x512xbf16>
    %c0_10 = arith.constant 0 : index
    %c0_11 = arith.constant 0 : index
    %109 = vector.load %arg7[%c0_10, %c0_11] : memref<512x128xbf16, #tpu.memory_space<vmem>>, vector<512x128xbf16>
    %cst_12 = arith.constant dense<0.000000e+00> : vector<16x128xf32>
    %110 = tpu.matmul %108, %109, %cst_12 {dimension_numbers = #tpu.dot_dimension_numbers<[1], [0], [0], [1], [0, 0, 1, 1], [], []>} : vector<16x512xbf16>, vector<512x128xbf16>, vector<16x128xf32> -> vector<16x128xf32>
    %c0_13 = arith.constant 0 : index
    %c0_14 = arith.constant 0 : index
    %111 = vector.load %arg6[%c0_13, %c0_14] : memref<16x1xf32, #tpu.memory_space<vmem>>, vector<16x1xf32>
    %112 = vector.broadcast %111 : vector<16x1xf32> to vector<16x128xf32>
    %113 = arith.addf %110, %112 : vector<16x128xf32>
    %114 = arith.negf %113 : vector<16x128xf32>
    %115 = math.exp %114 : vector<16x128xf32>
    %cst_15 = arith.constant 1.000000e+00 : f32
    %116 = vector.broadcast %cst_15 : f32 to vector<16x128xf32>
    %117 = arith.addf %116, %115 : vector<16x128xf32>
    %118 = arith.divf %116, %117 : vector<16x128xf32>
    %119 = arith.mulf %113, %118 : vector<16x128xf32>
    %c0_16 = arith.constant 0 : index
    %c0_17 = arith.constant 0 : index
    %120 = vector.load %arg12[%c0_16, %c0_17] : memref<128x2xf32, #tpu.memory_space<vmem>>, vector<128x2xf32>
    %cst_18 = arith.constant dense<0.000000e+00> : vector<16x2xf32>
    %121 = tpu.matmul %119, %120, %cst_18 {dimension_numbers = #tpu.dot_dimension_numbers<[1], [0], [0], [1], [0, 0, 1, 1], [], []>} : vector<16x128xf32>, vector<128x2xf32>, vector<16x2xf32> -> vector<16x2xf32>
    %c0_19 = arith.constant 0 : index
    %c0_20 = arith.constant 0 : index
    %122 = vector.load %arg8[%c0_19, %c0_20] : memref<1x16xf32, #tpu.memory_space<vmem>>, vector<1x16xf32>
    %c0_21 = arith.constant 0 : index
    %c0_22 = arith.constant 0 : index
    %123 = vector.load %arg10[%c0_21, %c0_22] : memref<16x1xf32, #tpu.memory_space<vmem>>, vector<16x1xf32>
    %cst_23 = arith.constant 0.000000e+00 : f32
    %124 = vector.broadcast %cst_23 : f32 to vector<1x2xf32>
    %125 = vector.extract_strided_slice %122 {offsets = [0, 0], sizes = [1, 1], strides = [1, 1]} : vector<1x16xf32> to vector<1x1xf32>
    %126 = vector.extract_strided_slice %121 {offsets = [0, 0], sizes = [1, 2], strides = [1, 1]} : vector<16x2xf32> to vector<1x2xf32>
    %127 = vector.broadcast %125 : vector<1x1xf32> to vector<1x2xf32>
    %128 = arith.mulf %127, %126 : vector<1x2xf32>
    %129 = arith.addf %124, %128 : vector<1x2xf32>
    %130 = vector.extract_strided_slice %122 {offsets = [0, 1], sizes = [1, 1], strides = [1, 1]} : vector<1x16xf32> to vector<1x1xf32>
    %131 = vector.extract_strided_slice %121 {offsets = [1, 0], sizes = [1, 2], strides = [1, 1]} : vector<16x2xf32> to vector<1x2xf32>
    %132 = vector.broadcast %130 : vector<1x1xf32> to vector<1x2xf32>
    %133 = arith.mulf %132, %131 : vector<1x2xf32>
    %134 = arith.addf %129, %133 : vector<1x2xf32>
    %135 = vector.extract_strided_slice %122 {offsets = [0, 2], sizes = [1, 1], strides = [1, 1]} : vector<1x16xf32> to vector<1x1xf32>
    %136 = vector.extract_strided_slice %121 {offsets = [2, 0], sizes = [1, 2], strides = [1, 1]} : vector<16x2xf32> to vector<1x2xf32>
    %137 = vector.broadcast %135 : vector<1x1xf32> to vector<1x2xf32>
    %138 = arith.mulf %137, %136 : vector<1x2xf32>
    %139 = arith.addf %134, %138 : vector<1x2xf32>
    %140 = vector.extract_strided_slice %122 {offsets = [0, 3], sizes = [1, 1], strides = [1, 1]} : vector<1x16xf32> to vector<1x1xf32>
    %141 = vector.extract_strided_slice %121 {offsets = [3, 0], sizes = [1, 2], strides = [1, 1]} : vector<16x2xf32> to vector<1x2xf32>
    %142 = vector.broadcast %140 : vector<1x1xf32> to vector<1x2xf32>
    %143 = arith.mulf %142, %141 : vector<1x2xf32>
    %144 = arith.addf %139, %143 : vector<1x2xf32>
    %145 = vector.extract_strided_slice %122 {offsets = [0, 4], sizes = [1, 1], strides = [1, 1]} : vector<1x16xf32> to vector<1x1xf32>
    %146 = vector.extract_strided_slice %121 {offsets = [4, 0], sizes = [1, 2], strides = [1, 1]} : vector<16x2xf32> to vector<1x2xf32>
    %147 = vector.broadcast %145 : vector<1x1xf32> to vector<1x2xf32>
    %148 = arith.mulf %147, %146 : vector<1x2xf32>
    %149 = arith.addf %144, %148 : vector<1x2xf32>
    %150 = vector.extract_strided_slice %122 {offsets = [0, 5], sizes = [1, 1], strides = [1, 1]} : vector<1x16xf32> to vector<1x1xf32>
    %151 = vector.extract_strided_slice %121 {offsets = [5, 0], sizes = [1, 2], strides = [1, 1]} : vector<16x2xf32> to vector<1x2xf32>
    %152 = vector.broadcast %150 : vector<1x1xf32> to vector<1x2xf32>
    %153 = arith.mulf %152, %151 : vector<1x2xf32>
    %154 = arith.addf %149, %153 : vector<1x2xf32>
    %155 = vector.extract_strided_slice %122 {offsets = [0, 6], sizes = [1, 1], strides = [1, 1]} : vector<1x16xf32> to vector<1x1xf32>
    %156 = vector.extract_strided_slice %121 {offsets = [6, 0], sizes = [1, 2], strides = [1, 1]} : vector<16x2xf32> to vector<1x2xf32>
    %157 = vector.broadcast %155 : vector<1x1xf32> to vector<1x2xf32>
    %158 = arith.mulf %157, %156 : vector<1x2xf32>
    %159 = arith.addf %154, %158 : vector<1x2xf32>
    %160 = vector.extract_strided_slice %122 {offsets = [0, 7], sizes = [1, 1], strides = [1, 1]} : vector<1x16xf32> to vector<1x1xf32>
    %161 = vector.extract_strided_slice %121 {offsets = [7, 0], sizes = [1, 2], strides = [1, 1]} : vector<16x2xf32> to vector<1x2xf32>
    %162 = vector.broadcast %160 : vector<1x1xf32> to vector<1x2xf32>
    %163 = arith.mulf %162, %161 : vector<1x2xf32>
    %164 = arith.addf %159, %163 : vector<1x2xf32>
    %165 = vector.extract_strided_slice %122 {offsets = [0, 8], sizes = [1, 1], strides = [1, 1]} : vector<1x16xf32> to vector<1x1xf32>
    %166 = vector.extract_strided_slice %121 {offsets = [8, 0], sizes = [1, 2], strides = [1, 1]} : vector<16x2xf32> to vector<1x2xf32>
    %167 = vector.broadcast %165 : vector<1x1xf32> to vector<1x2xf32>
    %168 = arith.mulf %167, %166 : vector<1x2xf32>
    %169 = arith.addf %164, %168 : vector<1x2xf32>
    %170 = vector.extract_strided_slice %122 {offsets = [0, 9], sizes = [1, 1], strides = [1, 1]} : vector<1x16xf32> to vector<1x1xf32>
    %171 = vector.extract_strided_slice %121 {offsets = [9, 0], sizes = [1, 2], strides = [1, 1]} : vector<16x2xf32> to vector<1x2xf32>
    %172 = vector.broadcast %170 : vector<1x1xf32> to vector<1x2xf32>
    %173 = arith.mulf %172, %171 : vector<1x2xf32>
    %174 = arith.addf %169, %173 : vector<1x2xf32>
    %175 = vector.extract_strided_slice %122 {offsets = [0, 10], sizes = [1, 1], strides = [1, 1]} : vector<1x16xf32> to vector<1x1xf32>
    %176 = vector.extract_strided_slice %121 {offsets = [10, 0], sizes = [1, 2], strides = [1, 1]} : vector<16x2xf32> to vector<1x2xf32>
    %177 = vector.broadcast %175 : vector<1x1xf32> to vector<1x2xf32>
    %178 = arith.mulf %177, %176 : vector<1x2xf32>
    %179 = arith.addf %174, %178 : vector<1x2xf32>
    %180 = vector.extract_strided_slice %122 {offsets = [0, 11], sizes = [1, 1], strides = [1, 1]} : vector<1x16xf32> to vector<1x1xf32>
    %181 = vector.extract_strided_slice %121 {offsets = [11, 0], sizes = [1, 2], strides = [1, 1]} : vector<16x2xf32> to vector<1x2xf32>
    %182 = vector.broadcast %180 : vector<1x1xf32> to vector<1x2xf32>
    %183 = arith.mulf %182, %181 : vector<1x2xf32>
    %184 = arith.addf %179, %183 : vector<1x2xf32>
    %185 = vector.extract_strided_slice %122 {offsets = [0, 12], sizes = [1, 1], strides = [1, 1]} : vector<1x16xf32> to vector<1x1xf32>
    %186 = vector.extract_strided_slice %121 {offsets = [12, 0], sizes = [1, 2], strides = [1, 1]} : vector<16x2xf32> to vector<1x2xf32>
    %187 = vector.broadcast %185 : vector<1x1xf32> to vector<1x2xf32>
    %188 = arith.mulf %187, %186 : vector<1x2xf32>
    %189 = arith.addf %184, %188 : vector<1x2xf32>
    %190 = vector.extract_strided_slice %122 {offsets = [0, 13], sizes = [1, 1], strides = [1, 1]} : vector<1x16xf32> to vector<1x1xf32>
    %191 = vector.extract_strided_slice %121 {offsets = [13, 0], sizes = [1, 2], strides = [1, 1]} : vector<16x2xf32> to vector<1x2xf32>
    %192 = vector.broadcast %190 : vector<1x1xf32> to vector<1x2xf32>
    %193 = arith.mulf %192, %191 : vector<1x2xf32>
    %194 = arith.addf %189, %193 : vector<1x2xf32>
    %195 = vector.extract_strided_slice %122 {offsets = [0, 14], sizes = [1, 1], strides = [1, 1]} : vector<1x16xf32> to vector<1x1xf32>
    %196 = vector.extract_strided_slice %121 {offsets = [14, 0], sizes = [1, 2], strides = [1, 1]} : vector<16x2xf32> to vector<1x2xf32>
    %197 = vector.broadcast %195 : vector<1x1xf32> to vector<1x2xf32>
    %198 = arith.mulf %197, %196 : vector<1x2xf32>
    %199 = arith.addf %194, %198 : vector<1x2xf32>
    %200 = vector.extract_strided_slice %122 {offsets = [0, 15], sizes = [1, 1], strides = [1, 1]} : vector<1x16xf32> to vector<1x1xf32>
    %201 = vector.extract_strided_slice %121 {offsets = [15, 0], sizes = [1, 2], strides = [1, 1]} : vector<16x2xf32> to vector<1x2xf32>
    %202 = vector.broadcast %200 : vector<1x1xf32> to vector<1x2xf32>
    %203 = arith.mulf %202, %201 : vector<1x2xf32>
    %204 = arith.addf %199, %203 : vector<1x2xf32>
    %c0_24 = arith.constant 0 : index
    %c0_25 = arith.constant 0 : index
    %205 = vector.load %arg9[%c0_24, %c0_25] : memref<1x1xf32, #tpu.memory_space<vmem>>, vector<1x1xf32>
    %206 = vector.broadcast %205 : vector<1x1xf32> to vector<1x2xf32>
    %207 = arith.addf %204, %206 : vector<1x2xf32>
    %208 = arith.negf %207 : vector<1x2xf32>
    %209 = math.exp %208 : vector<1x2xf32>
    %cst_26 = arith.constant 1.000000e+00 : f32
    %210 = vector.broadcast %cst_26 : f32 to vector<1x2xf32>
    %211 = arith.addf %210, %209 : vector<1x2xf32>
    %212 = arith.divf %210, %211 : vector<1x2xf32>
    %213 = arith.mulf %207, %212 : vector<1x2xf32>
    %cst_27 = arith.constant 0.000000e+00 : f32
    %214 = vector.broadcast %cst_27 : f32 to vector<16x2xf32>
    %215 = vector.broadcast %123 : vector<16x1xf32> to vector<16x2xf32>
    %216 = vector.broadcast %213 : vector<1x2xf32> to vector<16x2xf32>
    %217 = arith.mulf %215, %216 : vector<16x2xf32>
    %218 = arith.addf %214, %217 : vector<16x2xf32>
    %c0_28 = arith.constant 0 : index
    %c0_29 = arith.constant 0 : index
    %219 = vector.load %arg11[%c0_28, %c0_29] : memref<16x1xf32, #tpu.memory_space<vmem>>, vector<16x1xf32>
    %220 = vector.broadcast %219 : vector<16x1xf32> to vector<16x2xf32>
    %221 = arith.addf %218, %220 : vector<16x2xf32>
    %222 = arith.negf %221 : vector<16x2xf32>
    %223 = math.exp %222 : vector<16x2xf32>
    %cst_30 = arith.constant 1.000000e+00 : f32
    %224 = vector.broadcast %cst_30 : f32 to vector<16x2xf32>
    %225 = arith.addf %224, %223 : vector<16x2xf32>
    %226 = arith.divf %224, %225 : vector<16x2xf32>
    %c0_31 = arith.constant 0 : index
    %c0_32 = arith.constant 0 : index
    %227 = vector.load %arg13[%c0_31, %c0_32] : memref<2x128xf32, #tpu.memory_space<vmem>>, vector<2x128xf32>
    %cst_33 = arith.constant 0.000000e+00 : f32
    %228 = vector.broadcast %cst_33 : f32 to vector<16x128xf32>
    %229 = vector.extract_strided_slice %226 {offsets = [0, 0], sizes = [16, 1], strides = [1, 1]} : vector<16x2xf32> to vector<16x1xf32>
    %230 = vector.extract_strided_slice %227 {offsets = [0, 0], sizes = [1, 128], strides = [1, 1]} : vector<2x128xf32> to vector<1x128xf32>
    %231 = vector.broadcast %229 : vector<16x1xf32> to vector<16x128xf32>
    %232 = vector.broadcast %230 : vector<1x128xf32> to vector<16x128xf32>
    %233 = arith.mulf %231, %232 : vector<16x128xf32>
    %234 = arith.addf %228, %233 : vector<16x128xf32>
    %235 = vector.extract_strided_slice %226 {offsets = [0, 1], sizes = [16, 1], strides = [1, 1]} : vector<16x2xf32> to vector<16x1xf32>
    %236 = vector.extract_strided_slice %227 {offsets = [1, 0], sizes = [1, 128], strides = [1, 1]} : vector<2x128xf32> to vector<1x128xf32>
    %237 = vector.broadcast %235 : vector<16x1xf32> to vector<16x128xf32>
    %238 = vector.broadcast %236 : vector<1x128xf32> to vector<16x128xf32>
    %239 = arith.mulf %237, %238 : vector<16x128xf32>
    %240 = arith.addf %234, %239 : vector<16x128xf32>
    %241 = arith.mulf %119, %240 : vector<16x128xf32>
    %c0_34 = arith.constant 0 : index
    %c0_35 = arith.constant 0 : index
    %242 = vector.load %arg14[%c0_34, %c0_35] : memref<8x16xbf16, #tpu.memory_space<vmem>>, vector<8x16xbf16>
    %243 = arith.truncf %241 : vector<16x128xf32> to vector<16x128xbf16>
    %cst_36 = arith.constant dense<0.000000e+00> : vector<8x128xf32>
    %244 = tpu.matmul %242, %243, %cst_36 {dimension_numbers = #tpu.dot_dimension_numbers<[1], [0], [0], [1], [0, 0, 1, 1], [], []>} : vector<8x16xbf16>, vector<16x128xbf16>, vector<8x128xf32> -> vector<8x128xf32>
    %c0_37 = arith.constant 0 : index
    %c0_38 = arith.constant 0 : index
    %245 = vector.load %arg15[%c0_37, %c0_38] : memref<8x1xf32, #tpu.memory_space<vmem>>, vector<8x1xf32>
    %246 = vector.broadcast %245 : vector<8x1xf32> to vector<8x128xf32>
    %247 = arith.addf %244, %246 : vector<8x128xf32>
    %c0_39 = arith.constant 0 : index
    %c0_40 = arith.constant 0 : index
    %248 = vector.load %arg16[%c0_39, %c0_40] : memref<8x128xf32, #tpu.memory_space<vmem>>, vector<8x128xf32>
    tpu.vector_store %arg16[%c0_39, %c0_40], %247 {strides = array<i32>} : memref<8x128xf32, #tpu.memory_space<vmem>>, vector<8x128xf32>,
    return
  }
  func.func @transform_0(%arg0: i32) -> (i32, i32) {
    %c0_i32 = arith.constant 0 : i32
    %c0_i32_0 = arith.constant 0 : i32
    return %c0_i32, %arg0 : i32, i32
  }
  func.func @transform_1(%arg0: i32) -> (i32, i32) {
    %c0_i32 = arith.constant 0 : i32
    %c0_i32_0 = arith.constant 0 : i32
    %c0_i32_1 = arith.constant 0 : i32
    return %c0_i32, %c0_i32_0 : i32, i32
  }
  func.func @transform_2(%arg0: i32) -> (i32, i32) {
    %c0_i32 = arith.constant 0 : i32
    %c0_i32_0 = arith.constant 0 : i32
    %c0_i32_1 = arith.constant 0 : i32
    return %c0_i32, %c0_i32_0 : i32, i32
  }
  func.func @transform_3(%arg0: i32) -> (i32, i32) {
    %c0_i32 = arith.constant 0 : i32
    %c0_i32_0 = arith.constant 0 : i32
    %c0_i32_1 = arith.constant 0 : i32
    return %c0_i32, %c0_i32_0 : i32, i32
  }
  func.func @transform_4(%arg0: i32) -> (i32, i32) {
    %c0_i32 = arith.constant 0 : i32
    %c0_i32_0 = arith.constant 0 : i32
    %c0_i32_1 = arith.constant 0 : i32
    return %c0_i32, %c0_i32_0 : i32, i32
  }
  func.func @transform_5(%arg0: i32) -> (i32, i32) {
    %c0_i32 = arith.constant 0 : i32
    %c0_i32_0 = arith.constant 0 : i32
    %c0_i32_1 = arith.constant 0 : i32
    return %c0_i32, %c0_i32_0 : i32, i32
  }
  func.func @transform_6(%arg0: i32) -> (i32, i32) {
    %c0_i32 = arith.constant 0 : i32
    %c0_i32_0 = arith.constant 0 : i32
    %c0_i32_1 = arith.constant 0 : i32
    return %c0_i32, %c0_i32_0 : i32, i32
  }
  func.func @transform_7(%arg0: i32) -> (i32, i32) {
    %c0_i32 = arith.constant 0 : i32
    %c0_i32_0 = arith.constant 0 : i32
    %c0_i32_1 = arith.constant 0 : i32
    return %c0_i32, %c0_i32_0 : i32, i32
  }
  func.func @transform_8(%arg0: i32) -> (i32, i32) {
    %c0_i32 = arith.constant 0 : i32
    %c0_i32_0 = arith.constant 0 : i32
    %c0_i32_1 = arith.constant 0 : i32
    return %c0_i32, %c0_i32_0 : i32, i32
  }
  func.func @transform_9(%arg0: i32) -> (i32, i32) {
    %c0_i32 = arith.constant 0 : i32
    %c0_i32_0 = arith.constant 0 : i32
    %c0_i32_1 = arith.constant 0 : i32
    return %c0_i32, %c0_i32_0 : i32, i32
  }
  func.func @transform_10(%arg0: i32) -> (i32, i32) {
    %c0_i32 = arith.constant 0 : i32
    %c0_i32_0 = arith.constant 0 : i32
    %c0_i32_1 = arith.constant 0 : i32
    return %c0_i32, %c0_i32_0 : i32, i32
  }
  func.func @transform_11(%arg0: i32) -> (i32, i32) {
    %c0_i32 = arith.constant 0 : i32
    %c0_i32_0 = arith.constant 0 : i32
    %c0_i32_1 = arith.constant 0 : i32
    return %c0_i32, %c0_i32_0 : i32, i32
  }
  func.func @transform_12(%arg0: i32) -> (i32, i32) {
    %c0_i32 = arith.constant 0 : i32
    %c0_i32_0 = arith.constant 0 : i32
    %c0_i32_1 = arith.constant 0 : i32
    return %c0_i32, %c0_i32_0 : i32, i32
  }
  func.func @transform_13(%arg0: i32) -> (i32, i32) {
    %c0_i32 = arith.constant 0 : i32
    %c0_i32_0 = arith.constant 0 : i32
    %c0_i32_1 = arith.constant 0 : i32
    return %c0_i32, %c0_i32_0 : i32, i32
  }
  func.func @transform_14(%arg0: i32) -> (i32, i32) {
    %c0_i32 = arith.constant 0 : i32
    %c0_i32_0 = arith.constant 0 : i32
    %c0_i32_1 = arith.constant 0 : i32
    return %c0_i32, %c0_i32_0 : i32, i32
  }
  func.func @transform_15(%arg0: i32) -> (i32, i32) {
    %c0_i32 = arith.constant 0 : i32
    %c0_i32_0 = arith.constant 0 : i32
    return %c0_i32, %arg0 : i32, i32
  }
}

</mosaic_0001>

<bundles_post_ra>
// kernel: mbconv_forward.1
= control target key start
LH: loop header
LB: loop body
LE: loop exit
PB: predicated region body
PF: predicated region fallthrough
CT: control target
= control target key end

     0   :  { %v3417_v0 = vmov 1   ;;  %v3415_v1 = vmov 0   ;;  %v2148_v5 = vmov 2   ;;  %v3413_v6 = vmov 3   ;;  %s2155_s23 = smov 17   ;;  %s2157_s24 = smov 15   ;;  %s3393_s2 = inlined_call_operand.vmem [shape: f32[16,4], index: 2, kind: input, shape index: {}]   ;;  %s3394_s4 = inlined_call_operand.vmem [shape: f32[16,9], index: 4, kind: input, shape index: {}]   ;;  %s3395_s3 = inlined_call_operand.vmem [shape: f32[16,1], index: 3, kind: input, shape index: {}]   ;;  %s3396_s0 = inlined_call_operand.vmem [shape: f32[4,512], index: 0, kind: input, shape index: {}]   ;;  %s3397_s1 = inlined_call_operand.vmem [shape: f32[9,512], index: 1, kind: input, shape index: {}]   ;;  %s3398_s5 = inlined_call_operand.vmem [shape: f32[16,1], index: 5, kind: input, shape index: {}]   ;;  %s3399_s6 = inlined_call_operand.vmem [shape: bf16[512,128], index: 6, kind: input, shape index: {}]   ;;  %s3400_s11 = inlined_call_operand.vmem [shape: f32[128,2], index: 11, kind: input, shape index: {}]   ;;  %s3401_s7 = inlined_call_operand.vmem [shape: f32[1,16], index: 7, kind: input, shape index: {}]   ;;  %s3402_s8 = inlined_call_operand.<no memory space> [shape: f32[1,1], index: 8, kind: input, shape index: {}]   ;;  %s3403_s9 = inlined_call_operand.vmem [shape: f32[16,1], index: 9, kind: input, shape index: {}]   ;;  %s3404_s10 = inlined_call_operand.vmem [shape: f32[16,1], index: 10, kind: input, shape index: {}]   ;;  %s3405_s14 = inlined_call_operand.vmem [shape: f32[8,1], index: 14, kind: input, shape index: {}]   ;;  %s3406_s12 = inlined_call_operand.vmem [shape: f32[2,128], index: 12, kind: input, shape index: {}]   ;;  %s3407_s13 = inlined_call_operand.vmem [shape: bf16[8,16], index: 13, kind: input, shape index: {}]   ;;  %s3408_s15 = inlined_call_operand.vmem [shape: f32[8,128], index: 15, kind: output, shape index: {}]  }
   0x1   :  { %2018 = vset.pattern.permute.xlu1 %v3417_v0  ;;  %2017 = vset.pattern.permute.xlu0 %v3415_v1  ;;  %v55_v2 = vld [vmem:[%s3393_s2] sm:$0xff]  ;;  %v56_v3 = vld [vmem:[%s3393_s2 + $0x8] sm:$0xff]  ;;  %v3411_v10 = vmov 4   ;;  %v3414_v11 = vmov 5   ;;  %v3410_v12 = vmov 6   ;;  %v3409_v13 = vmov 7  }
   0x2   :  { %114 = vperm.xlu1 %2018, %v55_v2   ;;  %59 = vperm.xlu0 %2017, %v55_v2   ;;  %v2263_v4 = vld [vmem:[%s3394_s4 + $0x8] sm:$0xff]  ;;  %v2273_v7 = vld [vmem:[%s3394_s4] sm:$0xff]  ;;  %v69_v14 = vlaneseq  ;;  %s2156_s2 = smov 16   ;;  %s2158_s25 = smov 1   ;;  %vm2171_vm8 = vmmov 0   ;;  %vm1787_vm9 = vcmask 130048  }
   0x3   :  { %v293_v8 = vld [vmem:[%s3395_s3] sm:$0xff]  ;;  %v294_v9 = vld [vmem:[%s3395_s3 + $0x8] sm:$0xff]  ;;  %s2159_s26 = smov 127   ;;  %s2160_s27 = smov 113  }
   0x4   :  { %v70_v15 = vshrl.u32 %v69_v14, 7  ;;  %v53_v19 = vld [vmem:[%s3396_s0] sm:$0xff]  ;;  %v54_v20 = vld [vmem:[%s3396_s0 + $0x8] sm:$0xff]  ;;  %s2161_s28 = smov 112   ;;  %s2162_s3 = smov 111  }
   0x6   :  { %118 = vperm.xlu1 %2018, %v56_v3   ;;  %64 = vperm.xlu0 %2017, %v56_v3   ;;  %v2309_v16 = vsub.s32 1, %v70_v15  ;;  %v2311_v17 = vsub.s32 5, %v70_v15  ;;  %v2313_v18 = vsub.s32 0, %v70_v15  ;;  %v2321_v21 = vsub.s32 4, %v70_v15 }
   0x7   :  { %v2331_v32 = vsub.s32 2, %v70_v15  ;;  %v2333_v33 = vsub.s32 6, %v70_v15  ;;  %v2335_v34 = vsub.s32 3, %v70_v15  ;;  %v2337_v35 = vsub.s32 7, %v70_v15 }
   0x8   :  { %3443 = vst [vmem:[#allocation3_spill] sm:$0xff] %v2309_v16  ;;  %3444 = vst [vmem:[#allocation4_spill] sm:$0xff] %v2311_v17  ;;  %v124_v22 = vrot.slane %v53_v19, %v2309_v16  ;;  %v128_v23 = vrot.slane %v53_v19, %v2311_v17  ;;  %v132_v24 = vrot.slane %v54_v20, %v2309_v16 }
   0x9   :  { %3445 = vst [vmem:[#allocation5_spill] sm:$0xff] %v2313_v18  ;;  %v136_v25 = vrot.slane %v54_v20, %v2311_v17  ;;  %v72_v28 = vrot.slane %v53_v19, %v2313_v18  ;;  %v76_v29 = vrot.slane %v53_v19, %v2321_v21  ;;  %v80_v30 = vrot.slane %v54_v20, %v2313_v18 }
   0xa   :  { %2019 = vset.pattern.permute.xlu1 %v2148_v5  ;;  %2023 = vset.pattern.permute.xlu0 %v3417_v0  ;;  %v84_v31 = vrot.slane %v54_v20, %v2321_v21  ;;  %3446 = vst [vmem:[#allocation6_spill] sm:$0xff] %v2333_v33  ;;  %3447 = vst [vmem:[#allocation7_spill] sm:$0xff] %v2337_v35  ;;  %v144_v36 = vrot.slane %v124_v22, %v2309_v16 }
   0xb   :  { %178 = vperm.xlu1 %2019, %v56_v3   ;;  %510 = vperm.xlu0 %2023, %v2263_v4   ;;  %v148_v37 = vrot.slane %v128_v23, %v2309_v16  ;;  %v152_v38 = vrot.slane %v132_v24, %v2309_v16  ;;  %v156_v39 = vrot.slane %v136_v25, %v2309_v16 }
   0xc   :  { %v92_v40 = vrot.slane %v72_v28, %v2313_v18  ;;  %v96_v41 = vrot.slane %v76_v29, %v2313_v18  ;;  %v100_v42 = vrot.slane %v80_v30, %v2313_v18  ;;  %v104_v43 = vrot.slane %v84_v31, %v2313_v18 }
   0xd   :  { %v184_v46 = vrot.slane %v53_v19, %v2331_v32  ;;  %v188_v47 = vrot.slane %v53_v19, %v2333_v33  ;;  %v192_v48 = vrot.slane %v54_v20, %v2331_v32  ;;  %v196_v49 = vrot.slane %v54_v20, %v2333_v33 }
   0xe   :  { %v244_v50 = vrot.slane %v53_v19, %v2335_v34  ;;  %v248_v51 = vrot.slane %v53_v19, %v2337_v35  ;;  %v252_v52 = vrot.slane %v54_v20, %v2335_v34  ;;  %v256_v53 = vrot.slane %v54_v20, %v2337_v35 }
   0xf   :  { %2020 = vset.pattern.permute.xlu1 %v3413_v6  ;;  %2024 = vset.pattern.permute.xlu0 %v2148_v5 }
  0x10   :  { %234 = vperm.xlu1 %2020, %v55_v2   ;;  %174 = vperm.xlu0 %2024, %v55_v2   ;;  %v204_v2 = vrot.slane %v184_v46, %v2331_v32  ;;  %v264_v15 = vrot.slane %v244_v50, %v2335_v34  ;;  %v268_v19 = vrot.slane %v248_v51, %v2335_v34 }
  0x11   :  { %v272_v20 = vrot.slane %v252_v52, %v2335_v34  ;;  %v276_v22 = vrot.slane %v256_v53, %v2335_v34 }
  0x14   :  { %2021 = vset.pattern.permute.xlu1 %v3415_v1  ;;  %579 = vperm.xlu0 %2024, %v2273_v7  }
  0x15   :  { %297 = vperm.xlu1 %2021, %v293_v8   ;;  %v212_v8 = vrot.slane %v192_v48, %v2331_v32 }
  0x18   :  { %2025 = vset.pattern.permute.xlu0 %v3413_v6 }
  0x19   :  { %302 = vperm.xlu1 %2021, %v294_v9   ;;  %238 = vperm.xlu0 %2025, %v56_v3   ;;  %v208_v3 = vrot.slane %v188_v47, %v2331_v32  ;;  %v216_v9 = vrot.slane %v196_v49, %v2331_v32 }
  0x1d   :  { %437 = vperm.xlu1 %2021, %v2263_v4   ;;  %656 = vperm.xlu0 %2025, %v2263_v4  }
  0x21   :  { %2022 = vset.pattern.permute.xlu1 %v3417_v0  ;;  %2028 = vset.pattern.permute.xlu0 %v3411_v10 }
  0x22   :  { %506 = vperm.xlu1 %2022, %v2273_v7   ;;  %700 = vperm.xlu0 %2028, %v2273_v7  }
  0x26   :  { %2026 = vset.pattern.permute.xlu1 %v2148_v5  ;;  %2031 = vset.pattern.permute.xlu0 %v3414_v11 }
  0x27   :  { %583 = vperm.xlu1 %2026, %v2263_v4   ;;  %777 = vperm.xlu0 %2031, %v2263_v4  }
  0x2b   :  { %2027 = vset.pattern.permute.xlu1 %v3413_v6  ;;  %2032 = vset.pattern.permute.xlu0 %v3410_v12 }
  0x2c   :  { %652 = vperm.xlu1 %2027, %v2273_v7   ;;  %846 = vperm.xlu0 %2032, %v2273_v7  }
  0x30   :  { %2029 = vset.pattern.permute.xlu1 %v3411_v10  ;;  %2035 = vset.pattern.permute.xlu0 %v3409_v13 }
  0x31   :  { %704 = vperm.xlu1 %2029, %v2263_v4   ;;  %923 = vperm.xlu0 %2035, %v2263_v4  }
  0x35   :  { %2030 = vset.pattern.permute.xlu1 %v3414_v11 }
  0x36   :  { %773 = vperm.xlu1 %2030, %v2273_v7  }
  0x3a   :  { %2033 = vset.pattern.permute.xlu1 %v3410_v12 }
  0x3b   :  { %850 = vperm.xlu1 %2033, %v2263_v4  }
  0x3f   :  { %2034 = vset.pattern.permute.xlu1 %v3409_v13 }
  0x40   :  { %919 = vperm.xlu1 %2034, %v2273_v7  }
  0x7d   :  { %v115_v26 = vpop.permute.xlu1 %114  ;;  %v60_v27 = vpop.permute.xlu0 %59 }
  0x7e   :  { %v157_v54 = vmul.f32 %v144_v36, %v115_v26  ;;  %v158_v55 = vmul.f32 %v148_v37, %v115_v26  ;;  %v159_v56 = vmul.f32 %v152_v38, %v115_v26  ;;  %v160_v57 = vmul.f32 %v156_v39, %v115_v26 }
  0x7f   :  { %v105_v58 = vmul.f32 %v92_v40, %v60_v27  ;;  %v106_v59 = vmul.f32 %v96_v41, %v60_v27  ;;  %v107_v60 = vmul.f32 %v100_v42, %v60_v27  ;;  %v108_v61 = vmul.f32 %v104_v43, %v60_v27 }
  0x81   :  { %v119_v44 = vpop.permute.xlu1 %118  ;;  %v65_v45 = vpop.permute.xlu0 %64  ;;  %v165_v23 = vadd.f32 %v157_v54, %v105_v58  ;;  %v166_v24 = vadd.f32 %v158_v55, %v106_v59  ;;  %v167_v25 = vadd.f32 %v159_v56, %v107_v60  ;;  %v168_v26 = vadd.f32 %v160_v57, %v108_v61 }
  0x82   :  { %v161_v27 = vmul.f32 %v144_v36, %v119_v44  ;;  %v162_v28 = vmul.f32 %v148_v37, %v119_v44  ;;  %v163_v29 = vmul.f32 %v152_v38, %v119_v44  ;;  %v164_v30 = vmul.f32 %v156_v39, %v119_v44 }
  0x83   :  { %v109_v31 = vmul.f32 %v92_v40, %v65_v45  ;;  %v110_v46 = vmul.f32 %v96_v41, %v65_v45  ;;  %v111_v47 = vmul.f32 %v100_v42, %v65_v45  ;;  %v112_v48 = vmul.f32 %v104_v43, %v65_v45 }
  0x84   :  { %v3412_v59 = vmov 8  }
  0x85   :  { %2036 = vset.pattern.permute.xlu0 %v3412_v59  ;;  %v169_v60 = vadd.f32 %v161_v27, %v109_v31  ;;  %v170_v61 = vadd.f32 %v162_v28, %v110_v46  ;;  %2038 = vset.pattern.permute.xlu1 %v3412_v59 }
  0x86   :  { %v2355_v62 = vpop.permute.xlu0 %510  ;;  %v179_v63 = vpop.permute.xlu1 %178 }
  0x87   :  { %v221_v38 = vmul.f32 %v204_v2, %v179_v63  ;;  %v222_v39 = vmul.f32 %v208_v3, %v179_v63  ;;  %v224_v40 = vmul.f32 %v216_v9, %v179_v63 }
  0x8b   :  { %v175_v49 = vpop.permute.xlu0 %174  ;;  %v235_v50 = vpop.permute.xlu1 %234 }
  0x8c   :  { %v217_v13 = vmul.f32 %v204_v2, %v175_v49  ;;  %v218_v51 = vmul.f32 %v208_v3, %v175_v49  ;;  %v219_v12 = vmul.f32 %v212_v8, %v175_v49  ;;  %v220_v52 = vmul.f32 %v216_v9, %v175_v49 }
  0x8d   :  { %v277_v10 = vmul.f32 %v264_v15, %v235_v50  ;;  %v278_v53 = vmul.f32 %v268_v19, %v235_v50  ;;  %v279_v54 = vmul.f32 %v272_v20, %v235_v50  ;;  %v280_v55 = vmul.f32 %v276_v22, %v235_v50 }
  0x8e   :  { %v225_v56 = vadd.f32 %v217_v13, %v165_v23  ;;  %v226_v57 = vadd.f32 %v218_v51, %v166_v24  ;;  %v227_v36 = vadd.f32 %v219_v12, %v167_v25  ;;  %v228_v37 = vadd.f32 %v220_v52, %v168_v26 }
  0x8f   :  { %v2365_v41 = vpop.permute.xlu0 %579  ;;  %v172_v49 = vadd.f32 %v164_v30, %v112_v48  ;;  %v223_v12 = vmul.f32 %v212_v8, %v179_v63  ;;  %v171_v9 = vadd.f32 %v163_v29, %v111_v47  ;;  %v230_v25 = vadd.f32 %v222_v39, %v170_v61 }
  0x90   :  { %3448 = vst [vmem:[#allocation8_spill] sm:$0xff] %v2365_v41  ;;  %v298_v42 = vpop.permute.xlu1 %297  ;;  %v285_v43 = vadd.f32 %v277_v10, %v225_v56  ;;  %v286_v44 = vadd.f32 %v278_v53, %v226_v57  ;;  %v287_v45 = vadd.f32 %v279_v54, %v227_v36  ;;  %v288_v58 = vadd.f32 %v280_v55, %v228_v37 }
  0x91   :  { %v229_v10 = vadd.f32 %v221_v38, %v169_v60  ;;  %v232_v26 = vadd.f32 %v224_v40, %v172_v49  ;;  %v231_v46 = vadd.f32 %v223_v12, %v171_v9  ;;  %v2396_v9 = vld [vmem:[%s3397_s1] sm:$0xff] }
  0x92   :  { %v2369_v13 = vadd.f32 %v298_v42, %v285_v43  ;;  %v2371_v2 = vadd.f32 %v298_v42, %v286_v44  ;;  %v2373_v3 = vadd.f32 %v298_v42, %v287_v45  ;;  %v2375_v23 = vadd.f32 %v298_v42, %v288_v58  ;;  %3449 = vst [vmem:[#allocation9_spill] sm:$0xff] %v2396_v9 }
  0x94   :  { %v239_v24 = vpop.permute.xlu0 %238  ;;  %v1836_v27 = vmul.f32 -1.442695, %v2369_v13  ;;  %v1837_v28 = vmul.f32 -1.442695, %v2371_v2  ;;  %v1838_v48 = vmul.f32 -1.442695, %v2373_v3  ;;  %v303_v52 = vpop.permute.xlu1 %302 }
  0x95   :  { %v281_v30 = vmul.f32 %v264_v15, %v239_v24  ;;  %v282_v31 = vmul.f32 %v268_v19, %v239_v24  ;;  %v283_v63 = vmul.f32 %v272_v20, %v239_v24  ;;  %v284_v8 = vmul.f32 %v276_v22, %v239_v24  ;;  %v2403_v24 = vld [vmem:[%s3397_s1 + $0x8] sm:$0xff] }
  0x96   :  { %2094 = vpow2.f32 %v1836_v27  ;;  %v1839_v51 = vmul.f32 -1.442695, %v2375_v23 }
  0x97   :  { %v289_v50 = vadd.f32 %v281_v30, %v229_v10  ;;  %v290_v29 = vadd.f32 %v282_v31, %v230_v25  ;;  %v292_v47 = vadd.f32 %v284_v8, %v232_v26  ;;  %2096 = vpow2.f32 %v1837_v28  ;;  %v2412_v28 = vld [vmem:[%s3397_s1 + $0x10] sm:$0xff]  ;;  %v2420_v31 = vld [vmem:[%s3397_s1 + $0x18] sm:$0xff] }
  0x98   :  { %v291_v53 = vadd.f32 %v283_v63, %v231_v46  ;;  %2098 = vpow2.f32 %v1838_v48  ;;  %v2398_v10 = vpop.permute.xlu0 %656  ;;  %v2407_v26 = vrot.slane %v2396_v9, %v2321_v21  ;;  %3450 = vst [vmem:[#allocation10_spill] sm:$0xff] %v2420_v31  ;;  %v2424_v63 = vrot.slane %v2403_v24, %v2321_v21 }
  0x99   :  { %v2381_v54 = vadd.f32 %v303_v52, %v289_v50  ;;  %v2383_v55 = vadd.f32 %v303_v52, %v290_v29  ;;  %v2385_v15 = vadd.f32 %v303_v52, %v292_v47  ;;  %2100 = vpow2.f32 %v1839_v51 }
  0x9a   :  { %v2390_v56 = vadd.f32 %v303_v52, %v291_v53  ;;  %v2439_v51 = vrot.slane %v2420_v31, %v2321_v21 }
  0x9b   :  { %v1840_v19 = vmul.f32 -1.442695, %v2381_v54  ;;  %v1841_v20 = vmul.f32 -1.442695, %v2383_v55  ;;  %v1843_v22 = vmul.f32 -1.442695, %v2385_v15 }
  0x9c   :  { %v1842_v57 = vmul.f32 -1.442695, %v2390_v56 }
  0x9d   :  { %2102 = vpow2.f32 %v1840_v19  ;;  %v701_v46 = vpop.permute.xlu0 %700 }
  0x9e   :  { %2104 = vpow2.f32 %v1841_v20 }
  0x9f   :  { %2106 = vpow2.f32 %v1843_v22 }
  0xa0   :  { %2108 = vpow2.f32 %v1842_v57 }
  0xa3   :  { %v2095_v36 = vpop.eup %2094 }
  0xa4   :  { %v337_v37 = vadd.f32 1.0, %v2095_v36  ;;  %v2097_v38 = vpop.eup %2096 }
  0xa5   :  { %v338_v39 = vadd.f32 1.0, %v2097_v38  ;;  %v2099_v40 = vpop.eup %2098 }
  0xa6   :  { %2110 = vrcp.f32 %v337_v37  ;;  %v2101_v42 = vpop.eup %2100  ;;  %v339_v43 = vadd.f32 1.0, %v2099_v40 }
  0xa7   :  { %2112 = vrcp.f32 %v338_v39  ;;  %v340_v44 = vadd.f32 1.0, %v2101_v42 }
  0xa8   :  { %2114 = vrcp.f32 %v339_v43 }
  0xa9   :  { %2116 = vrcp.f32 %v340_v44 }
  0xaa   :  { %v2103_v45 = vpop.eup %2102 }
  0xab   :  { %v2105_v58 = vpop.eup %2104  ;;  %v341_v60 = vadd.f32 1.0, %v2103_v45 }
  0xac   :  { %v342_v61 = vadd.f32 1.0, %v2105_v58  ;;  %v2107_v49 = vpop.eup %2106  ;;  %v2544_v58 = vpop.permute.xlu0 %777 }
  0xad   :  { %2118 = vrcp.f32 %v341_v60  ;;  %v344_v12 = vadd.f32 1.0, %v2107_v49  ;;  %v2109_v25 = vpop.eup %2108  ;;  %3456 = vst [vmem:[#allocation16_spill] sm:$0xff] %v2544_v58 }
  0xae   :  { %2120 = vrcp.f32 %v342_v61  ;;  %v343_v48 = vadd.f32 1.0, %v2109_v25 }
  0xaf   :  { %2122 = vrcp.f32 %v344_v12 }
  0xb0   :  { %2124 = vrcp.f32 %v343_v48  ;;  %v2063_v48 = vld [vmem:[%s3399_s6 + $0x38] sm:$0xff]  }
  0xb3   :  { %v2111_v27 = vpop.eup %2110 }
  0xb4   :  { %v2415_v30 = vmul.f32 %v2111_v27, %v2369_v13  ;;  %v2113_v8 = vpop.eup %2112  ;;  %v2433_v13 = vrot.slane %v2412_v28, %v2321_v21 }
  0xb5   :  { %v2427_v50 = vmul.f32 %v2113_v8, %v2371_v2  ;;  %v2115_v47 = vpop.eup %2114  ;;  %v2062_v8 = vld [vmem:[%s3399_s6 + $0x78] sm:$0xff]  }
  0xb6   :  { %379 = vrot.lane.b32.xlu1 %v2415_v30, %s2155_s23  ;;  %v691_v29 = vmul.f32 %v2407_v26, %v2415_v30  ;;  %v2117_v52 = vpop.eup %2116  ;;  %v2442_v2 = vmul.f32 %v2115_v47, %v2373_v3  ;;  %1886 = vmatprep.subr.bf16.mxu0 %v2062_v8 }
  0xb7   :  { %383 = vrot.lane.b32.xlu0 %v2427_v50, %s2155_s23  ;;  %v692_v53 = vmul.f32 %v2424_v63, %v2427_v50  ;;  %v2451_v20 = vmul.f32 %v2117_v52, %v2375_v23  ;;  %v2064_v52 = vld [vmem:[%s3399_s6 + $0x70] sm:$0xff]   ;;  %1887 = vmatpush3.bf16.msra.mxu0 %v2063_v48 }
  0xb8   :  { %v2448_v19 = vmul.f32 %v701_v46, %v691_v29  ;;  %v693_v21 = vmul.f32 %v2433_v13, %v2442_v2  ;;  %v2594_v29 = vand.u32 127, %v69_v14  ;;  %1888 = vmatprep.subr.bf16.mxu0 %v2064_v52  ;;  %v2066_v14 = vld [vmem:[%s3399_s6 + $0xf8] sm:$0xff]   ;;  %v2070_v48 = vld [vmem:[%s3399_s6 + $0xf0] sm:$0xff]  }
  0xb9   :  { %v2455_v57 = vmul.f32 %v701_v46, %v692_v53  ;;  %v694_v36 = vmul.f32 %v2439_v51, %v2451_v20  ;;  %1908 = vmatprep.subr.bf16.mxu1 %v2066_v14  ;;  %v2071_v52 = vld [vmem:[%s3399_s6 + $0xb0] sm:$0xff]   ;;  %v2652_v14 = vrot.slane %v2396_v9, %v2309_v16 }
  0xba   :  { %3451 = vst [vmem:[#allocation11_spill] sm:$0xff] %v2448_v19  ;;  %v2119_v22 = vpop.eup %2118  ;;  %v2462_v38 = vmul.f32 %v701_v46, %v693_v21  ;;  %vm472_vm0 = vcmp.lt.s32.totalorder %v2594_v29, 16  ;;  %v2067_v21 = vld [vmem:[%s3399_s6 + $0xb8] sm:$0xff]   ;;  %vm397_vm1 = vcmp.lt.s32.totalorder %v2594_v29, 17  ;;  %vm545_vm2 = vcmp.lt.s32.totalorder %v2594_v29, 15 }
  0xbb   :  { %3452 = vst [vmem:[#allocation12_spill] sm:$0xff] %v2455_v57  ;;  %v2458_v3 = vmul.f32 %v2119_v22, %v2381_v54  ;;  %v2121_v37 = vpop.eup %2120  ;;  %456 = vrot.lane.b32.xlu0 %v2415_v30, %s2156_s2  ;;  %v2465_v23 = vmul.f32 %v701_v46, %v694_v36  ;;  %v1084_v46 = vld [vmem:[%s3398_s5 + $0x8] sm:$0xff]  ;;  %v2065_v22 = vld [vmem:[%s3399_s6 + $0x30] sm:$0xff]   ;;  %1909 = vmatpush3.bf16.msra.mxu1 %v2067_v21  ;;  %v2072_v21 = vld [vmem:[%s3399_s6 + $0x60] sm:$0xff]   ;;  %vm618_vm3 = vcmp.lt.s32.totalorder %v2594_v29, 1  ;;  %vm739_vm4 = vcmp.lt.s32.totalorder %v2594_v29, 127 }
  0xbc   :  { %3453 = vst [vmem:[#allocation13_spill] sm:$0xff] %v2462_v38  ;;  %v2123_v39 = vpop.eup %2122  ;;  %v2470_v40 = vmul.f32 %v2121_v37, %v2383_v55  ;;  %1889 = vmatpush3.bf16.msra.mxu0 %v2065_v22  ;;  %1910 = vmatprep.subr.bf16.mxu1 %v2070_v48  ;;  %v2075_v48 = vld [vmem:[%s3399_s6 + $0xa8] sm:$0xff]   ;;  %v2832_v38 = vrot.slane %v2396_v9, %v2331_v32  ;;  %vm812_vm5 = vcmp.lt.s32.totalorder %v2594_v29, 113  ;;  %vm885_vm6 = vcmp.lt.s32.totalorder %v2594_v29, 112 }
  0xbd   :  { %3454 = vst [vmem:[#allocation14_spill] sm:$0xff] %v2465_v23  ;;  %381 = vrot.lane.b32.xlu1 %v2458_v3, %s2155_s23  ;;  %v2476_v54 = vmul.f32 %v2123_v39, %v2385_v15  ;;  %v2125_v42 = vpop.eup %2124  ;;  %v2516_v15 = vpop.permute.xlu1 %437  ;;  %v2838_v19 = vrot.slane %v2403_v24, %v2313_v18  ;;  %vm958_vm7 = vcmp.lt.s32.totalorder %v2594_v29, 111 }
  0xbe   :  { %v2484_v55 = vmul.f32 %v2125_v42, %v2390_v56  ;;  %v2633_v42 = vrot.slane %v2396_v9, %v2313_v18  ;;  %3467 = vst [vmem:[#allocation26_spill] sm:$0xff] %v2832_v38 }
  0xbf   :  { %460 = vrot.lane.b32.xlu0 %v2427_v50, %s2156_s2  ;;  %1911 = vmatpush3.bf16.msra.mxu1 %v2071_v52 }
  0xc1   :  { %385 = vrot.lane.b32.xlu1 %v2470_v40, %s2155_s23  ;;  %v2521_v56 = vpop.permute.xlu1 %506 }
  0xc3   :  { %393 = vrot.lane.b32.xlu0 %v2476_v54, %s2155_s23 }
  0xc5   :  { %458 = vrot.lane.b32.xlu1 %v2458_v3, %s2156_s2  ;;  %v2528_v43 = vpop.permute.xlu1 %583 }
  0xc7   :  { %470 = vrot.lane.b32.xlu0 %v2476_v54, %s2156_s2 }
  0xc9   :  { %462 = vrot.lane.b32.xlu1 %v2470_v40, %s2156_s2  ;;  %v2534_v44 = vpop.permute.xlu1 %652 }
  0xca   :  { %3455 = vst [vmem:[#allocation15_spill] sm:$0xff] %v2534_v44  ;;  %v2851_v44 = vrot.slane %v2403_v24, %v2309_v16 }
  0xcb   :  { %389 = vrot.lane.b32.xlu0 %v2484_v55, %s2155_s23 }
  0xcd   :  { %391 = vrot.lane.b32.xlu1 %v2451_v20, %s2155_s23  ;;  %v2539_v45 = vpop.permute.xlu1 %704 }
  0xcf   :  { %466 = vrot.lane.b32.xlu0 %v2484_v55, %s2156_s2 }
  0xd1   :  { %468 = vrot.lane.b32.xlu1 %v2451_v20, %s2156_s2  ;;  %v2550_v60 = vpop.permute.xlu1 %773 }
  0xd2   :  { %3457 = vst [vmem:[#allocation17_spill] sm:$0xff] %v2550_v60 }
  0xd3   :  { %531 = vrot.lane.b32.xlu0 %v2458_v3, %s2157_s24 }
  0xd5   :  { %387 = vrot.lane.b32.xlu1 %v2442_v2, %s2155_s23  ;;  %v2558_v61 = vpop.permute.xlu1 %850 }
  0xd6   :  { %3459 = vst [vmem:[#allocation19_spill] sm:$0xff] %v2558_v61 }
  0xd7   :  { %535 = vrot.lane.b32.xlu0 %v2470_v40, %s2157_s24 }
  0xd9   :  { %464 = vrot.lane.b32.xlu1 %v2442_v2, %s2156_s2  ;;  %v2568_v12 = vpop.permute.xlu1 %919 }
  0xda   :  { %3461 = vst [vmem:[#allocation21_spill] sm:$0xff] %v2568_v12 }
  0xdb   :  { %537 = vrot.lane.b32.xlu0 %v2442_v2, %s2157_s24 }
  0xdd   :  { %529 = vrot.lane.b32.xlu1 %v2415_v30, %s2157_s24 }
  0xdf   :  { %602 = vrot.lane.b32.xlu0 %v2415_v30, %s2158_s25 }
  0xe1   :  { %533 = vrot.lane.b32.xlu1 %v2427_v50, %s2157_s24 }
  0xe3   :  { %606 = vrot.lane.b32.xlu0 %v2427_v50, %s2158_s25 }
  0xe5   :  { %541 = vrot.lane.b32.xlu1 %v2451_v20, %s2157_s24 }
  0xe7   :  { %616 = vrot.lane.b32.xlu0 %v2476_v54, %s2158_s25 }
  0xe9   :  { %543 = vrot.lane.b32.xlu1 %v2476_v54, %s2157_s24 }
  0xeb   :  { %612 = vrot.lane.b32.xlu0 %v2484_v55, %s2158_s25 }
  0xed   :  { %539 = vrot.lane.b32.xlu1 %v2484_v55, %s2157_s24 }
  0xef   :  { %731 = vrot.lane.b32.xlu0 %v2442_v2, %s2159_s26 }
  0xf1   :  { %604 = vrot.lane.b32.xlu1 %v2458_v3, %s2158_s25 }
  0xf3   :  { %725 = vrot.lane.b32.xlu0 %v2458_v3, %s2159_s26 }
  0xf5   :  { %608 = vrot.lane.b32.xlu1 %v2470_v40, %s2158_s25 }
  0xf7   :  { %737 = vrot.lane.b32.xlu0 %v2476_v54, %s2159_s26 }
  0xf9   :  { %614 = vrot.lane.b32.xlu1 %v2451_v20, %s2158_s25 }
  0xfb   :  { %802 = vrot.lane.b32.xlu0 %v2470_v40, %s2160_s27 }
  0xfd   :  { %610 = vrot.lane.b32.xlu1 %v2442_v2, %s2158_s25 }
  0xff   :  { %806 = vrot.lane.b32.xlu0 %v2484_v55, %s2160_s27 }
 0x101   :  { %727 = vrot.lane.b32.xlu1 %v2427_v50, %s2159_s26 }
 0x103   :  { %808 = vrot.lane.b32.xlu0 %v2451_v20, %s2160_s27 }
 0x105   :  { %729 = vrot.lane.b32.xlu1 %v2470_v40, %s2159_s26 }
 0x107   :  { %873 = vrot.lane.b32.xlu0 %v2427_v50, %s2161_s28 }
 0x109   :  { %733 = vrot.lane.b32.xlu1 %v2484_v55, %s2159_s26 }
 0x10b   :  { %877 = vrot.lane.b32.xlu0 %v2442_v2, %s2161_s28 }
 0x10d   :  { %723 = vrot.lane.b32.xlu1 %v2415_v30, %s2159_s26 }
 0x10f   :  { %992 = vperm.xlu0 %2036, %v2273_v7  }
 0x111   :  { %735 = vrot.lane.b32.xlu1 %v2451_v20, %s2159_s26 }
 0x113   :  { %2037 = vset.pattern.permute.xlu0 %v3415_v1 }
 0x114   :  { %432 = vperm.xlu0 %2037, %v2273_v7   ;;  %v2556_v7 = vpop.permute.xlu0 %846 }
 0x115   :  { %800 = vrot.lane.b32.xlu1 %v2427_v50, %s2160_s27  ;;  %3458 = vst [vmem:[#allocation18_spill] sm:$0xff] %v2556_v7  ;;  %v2686_v7 = vrot.slane %v2412_v28, %v2313_v18 }
 0x117   :  { %3462 = vst [vmem:[#allocation22_spill] sm:$0xff] %v2686_v7 }
 0x118   :  { %871 = vrot.lane.b32.xlu0 %v2458_v3, %s2161_s28  ;;  %v2564_v49 = vpop.permute.xlu0 %923 }
 0x119   :  { %804 = vrot.lane.b32.xlu1 %v2442_v2, %s2160_s27  ;;  %3460 = vst [vmem:[#allocation20_spill] sm:$0xff] %v2564_v49  ;;  %v2078_v49 = vld [vmem:[%s3399_s6 + $0xe0] sm:$0xff]  }
 0x11c   :  { %883 = vrot.lane.b32.xlu0 %v2476_v54, %s2161_s28 }
 0x11d   :  { %796 = vrot.lane.b32.xlu1 %v2415_v30, %s2160_s27 }
 0x120   :  { %948 = vrot.lane.b32.xlu0 %v2470_v40, %s2162_s3 }
 0x121   :  { %798 = vrot.lane.b32.xlu1 %v2458_v3, %s2160_s27 }
 0x124   :  { %952 = vrot.lane.b32.xlu0 %v2484_v55, %s2162_s3 }
 0x125   :  { %810 = vrot.lane.b32.xlu1 %v2476_v54, %s2160_s27 }
 0x128   :  { %944 = vrot.lane.b32.xlu0 %v2458_v3, %s2162_s3  ;;  %v2578_v27 = vpop.permute.xlu1 %379 }
 0x129   :  { %875 = vrot.lane.b32.xlu1 %v2470_v40, %s2161_s28  ;;  %v2576_v25 = vpop.permute.xlu0 %383 }
 0x12c   :  { %956 = vrot.lane.b32.xlu0 %v2476_v54, %s2162_s3 }
 0x12d   :  { %879 = vrot.lane.b32.xlu1 %v2484_v55, %s2161_s28  ;;  %v2596_v47 = vpop.permute.xlu0 %456 }
 0x12f   :  { %v2601_v53 = vpop.permute.xlu1 %381 }
 0x130   :  { %1092 = vperm.xlu0 %2037, %v1084_v46   ;;  %v2069_v46 = vld [vmem:[%s3399_s6 + $0x28] sm:$0xff]  }
 0x131   :  { %996 = vperm.xlu1 %2038, %v2263_v4   ;;  %v2614_v36 = vpop.permute.xlu0 %460  ;;  %v2068_v4 = vld [vmem:[%s3399_s6 + $0x68] sm:$0xff]  }
 0x132   :  { %v2620_v37 = vsel %vm472_vm0, %v2596_v47, %v2614_v36  ;;  %1890 = vmatprep.subr.bf16.mxu0 %v2068_v4  ;;  %v2073_v4 = vld [vmem:[%s3399_s6 + $0x20] sm:$0xff]  }
 0x133   :  { %v2622_v39 = vpop.permute.xlu1 %385  ;;  %1891 = vmatpush3.bf16.msra.mxu0 %v2069_v46  ;;  %v2074_v46 = vld [vmem:[%s3399_s6 + $0xe8] sm:$0xff]  }
 0x134   :  { %2042 = vset.pattern.permute.xlu0 %v2148_v5  ;;  %1892 = vmatprep.subr.bf16.mxu0 %v2072_v21  ;;  %v2079_v21 = vld [vmem:[%s3399_s6 + $0xa0] sm:$0xff]  }
 0x135   :  { %869 = vrot.lane.b32.xlu1 %v2415_v30, %s2161_s28  ;;  %v394_v8 = vpop.permute.xlu0 %393  ;;  %1912 = vmatprep.subr.bf16.mxu1 %v2074_v46  ;;  %v2697_v46 = vrot.slane %v2420_v31, %v2313_v18  ;;  %v2859_v18 = vrot.slane %v2412_v28, %v2331_v32 }
 0x136   :  { %2039 = vset.pattern.permute.xlu1 %v3415_v1  ;;  %v405_v5 = vsel %vm397_vm1, %v394_v8, %v2601_v53  ;;  %v2077_v1 = vld [vmem:[%s3399_s6 + $0x18] sm:$0xff]   ;;  %1913 = vmatpush3.bf16.msra.mxu1 %v2075_v48 }
 0x137   :  { %v2648_v22 = vpop.permute.xlu1 %458  ;;  %v426_v59 = vmul.f32 %v2633_v42, %v405_v5  ;;  %v2076_v5 = vld [vmem:[%s3399_s6 + $0x58] sm:$0xff]   ;;  %1893 = vmatpush3.bf16.msra.mxu0 %v2073_v4  ;;  %3463 = vst [vmem:[#allocation23_spill] sm:$0xff] %v2697_v46  ;;  %1914 = vmatprep.subr.bf16.mxu1 %v2078_v49  ;;  %v2716_v49 = vrot.slane %v2412_v28, %v2309_v16 }
 0x138   :  { %1894 = vmatprep.subr.bf16.mxu0 %v2076_v5  ;;  %v2720_v5 = vrot.slane %v2420_v31, %v2309_v16 }
 0x139   :  { %881 = vrot.lane.b32.xlu1 %v2451_v20, %s2161_s28  ;;  %v471_v6 = vpop.permute.xlu0 %470 }
 0x13a   :  { %v480_v52 = vsel %vm472_vm0, %v471_v6, %v2648_v22  ;;  %1915 = vmatpush3.bf16.msra.mxu1 %v2079_v21 }
 0x13b   :  { %v2672_v11 = vpop.permute.xlu1 %462  ;;  %v501_v0 = vmul.f32 %v2652_v14, %v480_v52  ;;  %v444_v52 = vmul.f32 %v2516_v15, %v426_v59  ;;  %1895 = vmatpush3.bf16.msra.mxu0 %v2077_v1 }
 0x13d   :  { %946 = vrot.lane.b32.xlu1 %v2427_v50, %s2162_s3  ;;  %v517_v4 = vmul.f32 %v2355_v62, %v501_v0  ;;  %v390_v12 = vpop.permute.xlu0 %389  ;;  %v2080_v50 = vld [vmem:[%s3399_s6 + $0x50] sm:$0xff]  }
 0x13e   :  { %v399_v48 = vsel %vm397_vm1, %v390_v12, %v394_v8  ;;  %v401_v59 = vsel %vm397_vm1, %v2622_v39, %v390_v12  ;;  %v2081_v0 = vld [vmem:[%s3399_s6 + $0x10] sm:$0xff]   ;;  %v2082_v12 = vld [vmem:[%s3399_s6 + $0xd8] sm:$0xff]   ;;  %1896 = vmatprep.subr.bf16.mxu0 %v2080_v50  ;;  %v2084_v50 = vld [vmem:[%s3399_s6 + $0x48] sm:$0xff]  }
 0x13f   :  { %v2707_v60 = vpop.permute.xlu1 %391  ;;  %v2712_v61 = vadd.f32 %v517_v4, %v444_v52  ;;  %v428_v8 = vmul.f32 %v2686_v7, %v401_v59  ;;  %v2083_v52 = vld [vmem:[%s3399_s6 + $0x98] sm:$0xff]   ;;  %v429_v4 = vmul.f32 %v2697_v46, %v399_v48  ;;  %1916 = vmatprep.subr.bf16.mxu1 %v2082_v12  ;;  %1897 = vmatpush3.bf16.msra.mxu0 %v2081_v0 }
 0x140   :  { %1917 = vmatpush3.bf16.msra.mxu1 %v2083_v52  ;;  %1898 = vmatprep.subr.bf16.mxu0 %v2084_v50  ;;  %v2088_v52 = vld [vmem:[%s3399_s6 + $0x40] sm:$0xff]  }
 0x141   :  { %950 = vrot.lane.b32.xlu1 %v2442_v2, %s2162_s3  ;;  %v467_v35 = vpop.permute.xlu0 %466  ;;  %v446_v48 = vmul.f32 %v2516_v15, %v428_v8  ;;  %v447_v0 = vmul.f32 %v2516_v15, %v429_v4  ;;  %v2089_v4 = vld [vmem:[%s3399_s6] sm:$0xff]  }
 0x142   :  { %v474_v1 = vsel %vm472_vm0, %v467_v35, %v471_v6  ;;  %v476_v59 = vsel %vm472_vm0, %v2672_v11, %v467_v35  ;;  %v2085_v6 = vld [vmem:[%s3399_s6 + $0x8] sm:$0xff]   ;;  %v2086_v35 = vld [vmem:[%s3399_s6 + $0xd0] sm:$0xff]  }
 0x143   :  { %v469_v58 = vpop.permute.xlu1 %468  ;;  %v503_v2 = vmul.f32 %v2716_v49, %v476_v59  ;;  %v504_v21 = vmul.f32 %v2720_v5, %v474_v1  ;;  %1918 = vmatprep.subr.bf16.mxu1 %v2086_v35  ;;  %1899 = vmatpush3.bf16.msra.mxu0 %v2085_v6  ;;  %v2092_v6 = vld [vmem:[%s3399_s6 + $0xc0] sm:$0xff]  }
 0x144   :  { %v2742_v33 = vsel %vm472_vm0, %v469_v58, %v2596_v47  ;;  %v2087_v47 = vld [vmem:[%s3399_s6 + $0x90] sm:$0xff]   ;;  %1900 = vmatprep.subr.bf16.mxu0 %v2088_v52  ;;  %v1083_v52 = vld [vmem:[%s3398_s5] sm:$0xff] }
 0x145   :  { %942 = vrot.lane.b32.xlu1 %v2415_v30, %s2162_s3  ;;  %v519_v12 = vmul.f32 %v2355_v62, %v503_v2  ;;  %v520_v1 = vmul.f32 %v2355_v62, %v504_v21  ;;  %v532_v59 = vpop.permute.xlu0 %531  ;;  %v2090_v2 = vld [vmem:[%s3399_s6 + $0xc8] sm:$0xff]   ;;  %1919 = vmatpush3.bf16.msra.mxu1 %v2087_v47  ;;  %v2093_v47 = vld [vmem:[%s3399_s6 + $0x80] sm:$0xff]  }
 0x146   :  { %v2091_v21 = vld [vmem:[%s3399_s6 + $0x88] sm:$0xff]   ;;  %1920 = vmatprep.subr.bf16.mxu1 %v2090_v2 }
 0x147   :  { %v2762_v17 = vpop.permute.xlu1 %387  ;;  %v2764_v8 = vadd.f32 %v519_v12, %v446_v48  ;;  %v2766_v23 = vadd.f32 %v520_v1, %v447_v0  ;;  %1901 = vmatpush3.bf16.msra.mxu0 %v2089_v4 }
 0x148   :  { %v2772_v30 = vsel %vm397_vm1, %v2576_v25, %v2762_v17 }
 0x149   :  { %3464 = vst [vmem:[#allocation24_spill] sm:$0xff] %v2772_v30  ;;  %954 = vrot.lane.b32.xlu1 %v2451_v20, %s2162_s3  ;;  %v536_v50 = vpop.permute.xlu0 %535  ;;  %1921 = vmatpush3.bf16.msra.mxu1 %v2091_v21  ;;  %v3465_v21 = vmov 1  }
 0x14a   :  { %v551_v35 = vsel %vm545_vm2, %v532_v59, %v536_v50  ;;  %1922 = vmatprep.subr.bf16.mxu1 %v2092_v6 }
 0x14b   :  { %v465_v48 = vpop.permute.xlu1 %464 }
 0x14c   :  { %v2796_v0 = vsel %vm472_vm0, %v465_v48, %v469_v58  ;;  %v2801_v20 = vsel %vm472_vm0, %v2614_v36, %v465_v48 }
 0x14d   :  { %v538_v12 = vpop.permute.xlu0 %537  ;;  %1087 = vperm.xlu1 %2039, %v1083_v52   ;;  %1923 = vmatpush3.bf16.msra.mxu1 %v2093_v47 }
 0x14f   :  { %v530_v1 = vpop.permute.xlu1 %529 }
 0x151   :  { %v2809_v58 = vpop.permute.xlu0 %602  ;;  %2040 = vset.pattern.permute.xlu1 %v3465_v21 }
 0x153   :  { %v534_v2 = vpop.permute.xlu1 %533 }
 0x154   :  { %v2813_v36 = vsel %vm545_vm2, %v534_v2, %v538_v12  ;;  %v2817_v4 = vsel %vm545_vm2, %v530_v1, %v534_v2 }
 0x155   :  { %v2820_v6 = vpop.permute.xlu0 %606 }
 0x157   :  { %v542_v48 = vpop.permute.xlu1 %541 }
 0x158   :  { %v2824_v52 = vsel %vm545_vm2, %v538_v12, %v542_v48  ;;  %v2828_v47 = vsel %vm545_vm2, %v542_v48, %v530_v1  ;;  %v478_v12 = vsel %vm472_vm0, %v2648_v22, %v2672_v11  ;;  %v2847_v48 = vrot.slane %v2420_v31, %v2335_v34 }
 0x159   :  { %3466 = vst [vmem:[#allocation25_spill] sm:$0xff] %v2824_v52  ;;  %v617_v57 = vpop.permute.xlu0 %616  ;;  %v403_v22 = vsel %vm397_vm1, %v2601_v53, %v2622_v39  ;;  %v502_v7 = vmul.f32 %v2851_v44, %v478_v12  ;;  %v2880_v53 = vrot.slane %v2396_v9, %v2335_v34  ;;  %v698_v12 = vmul.f32 %v2439_v51, %v2476_v54 }
 0x15a   :  { %v2901_v51 = vrot.slane %v2412_v28, %v2335_v34 }
 0x15b   :  { %v544_v2 = vpop.permute.xlu1 %543 }
 0x15c   :  { %v553_v21 = vsel %vm545_vm2, %v544_v2, %v532_v59  ;;  %v2855_v59 = vrot.slane %v2403_v24, %v2331_v32 }
 0x15d   :  { %v574_v1 = vmul.f32 %v2832_v38, %v553_v21  ;;  %v613_v11 = vpop.permute.xlu0 %612  ;;  %v2868_v21 = vrot.slane %v2420_v31, %v2331_v32 }
 0x15e   :  { %v620_v41 = vsel %vm618_vm3, %v613_v11, %v617_v57 }
 0x15f   :  { %v590_v16 = vmul.f32 %v2528_v43, %v574_v1  ;;  %v540_v46 = vpop.permute.xlu1 %539  ;;  %v650_v39 = vmul.f32 %v2847_v48, %v620_v41  ;;  %v695_v41 = vmul.f32 %v2407_v26, %v2458_v3  ;;  %v696_v26 = vmul.f32 %v2424_v63, %v2470_v40 }
 0x160   :  { %v547_v30 = vsel %vm545_vm2, %v540_v46, %v544_v2  ;;  %v549_v52 = vsel %vm545_vm2, %v536_v50, %v540_v46  ;;  %v427_v2 = vmul.f32 %v2838_v19, %v403_v22  ;;  %v575_v46 = vmul.f32 %v2855_v59, %v551_v35 }
 0x161   :  { %v598_v32 = vadd.f32 %v590_v16, %v2712_v61  ;;  %v576_v1 = vmul.f32 %v2859_v18, %v549_v52  ;;  %v577_v31 = vmul.f32 %v2868_v21, %v547_v30  ;;  %v2889_v38 = vpop.permute.xlu0 %731  ;;  %v518_v61 = vmul.f32 %v2355_v62, %v502_v7 }
 0x162   :  { %v666_v54 = vmul.f32 %v2398_v10, %v650_v39  ;;  %v697_v62 = vmul.f32 %v2433_v13, %v2484_v55  ;;  %v445_v3 = vmul.f32 %v2516_v15, %v427_v2  ;;  %v591_v22 = vmul.f32 %v2528_v43, %v575_v46 }
 0x163   :  { %v592_v50 = vmul.f32 %v2528_v43, %v576_v1  ;;  %v593_v9 = vmul.f32 %v2528_v43, %v577_v31  ;;  %v605_v16 = vpop.permute.xlu1 %604  ;;  %v711_v63 = vmul.f32 %v2539_v45, %v695_v41 }
 0x164   :  { %v626_v30 = vsel %vm618_vm3, %v617_v57, %v605_v16  ;;  %v714_v57 = vmul.f32 %v2539_v45, %v698_v12  ;;  %v526_v40 = vadd.f32 %v518_v61, %v445_v3 }
 0x165   :  { %v600_v35 = vadd.f32 %v592_v50, %v2764_v8  ;;  %v601_v52 = vadd.f32 %v593_v9, %v2766_v23  ;;  %v647_v31 = vmul.f32 %v2880_v53, %v626_v30  ;;  %v2913_v7 = vpop.permute.xlu0 %725  ;;  %v634_v8 = vrot.slane %v2403_v24, %v2335_v34 }
 0x166   :  { %v599_v2 = vadd.f32 %v591_v22, %v526_v40  ;;  %v498_v40 = vmul.f32 %v2851_v44, %v2620_v37 }
 0x167   :  { %v674_v9 = vadd.f32 %v666_v54, %v601_v52  ;;  %v663_v23 = vmul.f32 %v2398_v10, %v647_v31  ;;  %v609_v39 = vpop.permute.xlu1 %608 }
 0x168   :  { %v622_v13 = vsel %vm618_vm3, %v609_v39, %v613_v11  ;;  %v624_v55 = vsel %vm618_vm3, %v605_v16, %v609_v39  ;;  %v712_v11 = vmul.f32 %v2539_v45, %v696_v26  ;;  %v713_v16 = vmul.f32 %v2539_v45, %v697_v62 }
 0x169   :  { %v671_v15 = vadd.f32 %v663_v23, %v598_v32  ;;  %v648_v1 = vmul.f32 %v634_v8, %v624_v55  ;;  %v649_v43 = vmul.f32 %v2901_v51, %v622_v13  ;;  %v2925_v12 = vadd.f32 %v714_v57, %v674_v9  ;;  %v2927_v34 = vpop.permute.xlu0 %737 }
 0x16a   :  { %v402_v13 = vsel %vm397_vm1, %v2578_v27, %v2576_v25  ;;  %v404_v55 = vsel %vm397_vm1, %v2707_v60, %v2578_v27 }
 0x16b   :  { %v664_v46 = vmul.f32 %v2398_v10, %v648_v1  ;;  %v665_v50 = vmul.f32 %v2398_v10, %v649_v43  ;;  %v615_v41 = vpop.permute.xlu1 %614  ;;  %v2931_v61 = vadd.f32 %v711_v63, %v671_v15  ;;  %v497_v15 = vmul.f32 %v2652_v14, %v2742_v33 }
 0x16c   :  { %v499_v1 = vmul.f32 %v2716_v49, %v2801_v20  ;;  %v500_v43 = vmul.f32 %v2720_v5, %v2796_v0  ;;  %v423_v25 = vmul.f32 %v2838_v19, %v402_v13  ;;  %v398_v33 = vsel %vm397_vm1, %v2762_v17, %v2707_v60  ;;  %v3468_v60 = vld [vmem:[#allocation26_spill] sm:$0xff]  ;;  %v3469_v0 = vld [vmem:[#allocation25_spill] sm:$0xff] }
 0x16d   :  { %v672_v32 = vadd.f32 %v664_v46, %v599_v2  ;;  %v673_v30 = vadd.f32 %v665_v50, %v600_v35  ;;  %v2935_v54 = vpop.permute.xlu0 %802  ;;  %v514_v2 = vmul.f32 %v2521_v56, %v498_v40  ;;  %v422_v46 = vmul.f32 %v2633_v42, %v404_v55  ;;  %v3470_v50 = vld [vmem:[#allocation24_spill] sm:$0xff] }
 0x16e   :  { %v513_v27 = vmul.f32 %v2521_v56, %v497_v15  ;;  %v623_v14 = vsel %vm618_vm3, %v2809_v58, %v2820_v6  ;;  %v625_v19 = vsel %vm618_vm3, %v615_v41, %v2809_v58  ;;  %v571_v49 = vmul.f32 %v2855_v59, %v2817_v4  ;;  %v3472_v58 = vld [vmem:[#allocation23_spill] sm:$0xff]  ;;  %v3473_v55 = vld [vmem:[#allocation8_spill] sm:$0xff] }
 0x16f   :  { %v611_v52 = vpop.permute.xlu1 %610  ;;  %v2937_v31 = vadd.f32 %v712_v11, %v672_v32  ;;  %v2939_v57 = vadd.f32 %v713_v16, %v673_v30  ;;  %v572_v17 = vmul.f32 %v2859_v18, %v2813_v36  ;;  %v570_v5 = vmul.f32 %v3468_v60, %v2828_v47  ;;  %v3471_v11 = vld [vmem:[#allocation22_spill] sm:$0xff] }
 0x170   :  { %v619_v3 = vsel %vm618_vm3, %v611_v52, %v615_v41  ;;  %v621_v42 = vsel %vm618_vm3, %v2820_v6, %v611_v52  ;;  %v573_v20 = vmul.f32 %v2868_v21, %v3469_v0  ;;  %v424_v16 = vmul.f32 %v3471_v11, %v3470_v50  ;;  %v3476_v11 = vld [vmem:[#allocation13_spill] sm:$0xff] }
 0x171   :  { %v2945_v22 = vpop.permute.xlu0 %806  ;;  %v425_v41 = vmul.f32 %v3472_v58, %v398_v33  ;;  %v515_v32 = vmul.f32 %v2521_v56, %v499_v1  ;;  %v516_v6 = vmul.f32 %v2521_v56, %v500_v43  ;;  %v644_v30 = vmul.f32 %v634_v8, %v623_v14  ;;  %v3477_v58 = vld [vmem:[#allocation12_spill] sm:$0xff] }
 0x172   :  { %v643_v4 = vmul.f32 %v2880_v53, %v625_v19  ;;  %v645_v18 = vmul.f32 %v2901_v51, %v621_v42  ;;  %v646_v36 = vmul.f32 %v2847_v48, %v619_v3  ;;  %v587_v15 = vmul.f32 %v3473_v55, %v571_v49  ;;  %v3474_v48 = vld [vmem:[#allocation15_spill] sm:$0xff] }
 0x173   :  { %v2943_v10 = vpop.permute.xlu1 %727  ;;  %v588_v1 = vmul.f32 %v3473_v55, %v572_v17  ;;  %v586_v56 = vmul.f32 %v3473_v55, %v570_v5  ;;  %v589_v8 = vmul.f32 %v3473_v55, %v573_v20  ;;  %v660_v3 = vmul.f32 %v3474_v48, %v644_v30  ;;  %v3475_v20 = vld [vmem:[#allocation11_spill] sm:$0xff] }
 0x174   :  { %v659_v14 = vmul.f32 %v3474_v48, %v643_v4 }
 0x175   :  { %v2949_v26 = vpop.permute.xlu0 %808 }
 0x177   :  { %v2947_v9 = vpop.permute.xlu1 %729 }
 0x178   :  { %v745_v55 = vsel %vm739_vm4, %v2913_v7, %v2947_v9 }
 0x179   :  { %v2955_v62 = vpop.permute.xlu0 %873 }
 0x17b   :  { %v2951_v45 = vpop.permute.xlu1 %733 }
 0x17d   :  { %v2959_v39 = vpop.permute.xlu0 %877 }
 0x17f   :  { %v2953_v35 = vpop.permute.xlu1 %723 }
 0x183   :  { %v2957_v23 = vpop.permute.xlu1 %735 }
 0x187   :  { %v2961_v63 = vpop.permute.xlu1 %800 }
 0x18a   :  { %v2979_v44 = vpop.permute.xlu0 %992 }
 0x18b   :  { %v2981_v37 = vpop.permute.xlu1 %804 }
 0x18f   :  { %v433_v47 = vpop.permute.xlu0 %432  ;;  %v3017_v59 = vpop.permute.xlu1 %796 }
 0x190   :  { %v440_v21 = vmul.f32 %v433_v47, %v422_v46  ;;  %v441_v52 = vmul.f32 %v433_v47, %v423_v25  ;;  %v442_v40 = vmul.f32 %v433_v47, %v424_v16  ;;  %v443_v13 = vmul.f32 %v433_v47, %v425_v41 }
 0x191   :  { %v661_v25 = vmul.f32 %v3474_v48, %v645_v18  ;;  %v662_v46 = vmul.f32 %v3474_v48, %v646_v36  ;;  %v3479_v18 = vld [vmem:[#allocation4_spill] sm:$0xff]  ;;  %v3480_v36 = vld [vmem:[#allocation10_spill] sm:$0xff]  ;;  %v741_v48 = vsel %vm739_vm4, %v2951_v45, %v2927_v34 }
 0x192   :  { %v521_v53 = vadd.f32 %v513_v27, %v440_v21  ;;  %v522_v43 = vadd.f32 %v514_v2, %v441_v52  ;;  %v523_v51 = vadd.f32 %v515_v32, %v442_v40  ;;  %v524_v33 = vadd.f32 %v516_v6, %v443_v13  ;;  %v3478_v32 = vld [vmem:[#allocation14_spill] sm:$0xff]  ;;  %v3481_v40 = vld [vmem:[#allocation9_spill] sm:$0xff] }
 0x193   :  { %v3027_v60 = vpop.permute.xlu1 %798  ;;  %v3043_v4 = vpop.permute.xlu0 %871  ;;  %v763_v47 = vrot.slane %v3480_v36, %v3479_v18  ;;  %v747_v21 = vsel %vm739_vm4, %v2927_v34, %v2913_v7  ;;  %v751_v13 = vrot.slane %v3481_v40, %v3479_v18  ;;  %v755_v7 = vrot.slane %v2403_v24, %v3479_v18 }
 0x194   :  { %v594_v19 = vadd.f32 %v586_v56, %v521_v53  ;;  %v595_v42 = vadd.f32 %v587_v15, %v522_v43  ;;  %v596_v49 = vadd.f32 %v588_v1, %v523_v51  ;;  %v597_v17 = vadd.f32 %v589_v8, %v524_v33  ;;  %v3482_v56 = vld [vmem:[#allocation6_spill] sm:$0xff] }
 0x195   :  { %v771_v1 = vmul.f32 %v763_v47, %v747_v21  ;;  %v828_v8 = vrot.slane %v2403_v24, %v3482_v56  ;;  %v759_v53 = vrot.slane %v2412_v28, %v3479_v18  ;;  %v743_v43 = vsel %vm739_vm4, %v2947_v9, %v2951_v45 }
 0x196   :  { %v667_v5 = vadd.f32 %v659_v14, %v594_v19  ;;  %v668_v0 = vadd.f32 %v660_v3, %v595_v42  ;;  %v669_v27 = vadd.f32 %v661_v25, %v596_v49  ;;  %v670_v2 = vadd.f32 %v662_v46, %v597_v17  ;;  %v3483_v14 = vld [vmem:[#allocation16_spill] sm:$0xff]  ;;  %v3484_v49 = vld [vmem:[#allocation7_spill] sm:$0xff] }
 0x197   :  { %v3041_v30 = vpop.permute.xlu1 %810  ;;  %v3061_v15 = vpop.permute.xlu0 %883  ;;  %v816_v51 = vsel %vm812_vm5, %v2935_v54, %v2945_v22  ;;  %v768_v33 = vmul.f32 %v751_v13, %v745_v55  ;;  %v742_v3 = vsel %vm739_vm4, %v2943_v10, %v2889_v38  ;;  %v787_v25 = vmul.f32 %v3483_v14, %v771_v1  ;;  %v3485_v55 = vld [vmem:[#allocation19_spill] sm:$0xff] }
 0x198   :  { %v3030_v50 = vadd.f32 %v3475_v20, %v667_v5  ;;  %v3033_v16 = vadd.f32 %v3476_v11, %v669_v27  ;;  %v3036_v41 = vadd.f32 %v3477_v58, %v668_v0  ;;  %v3039_v6 = vadd.f32 %v3478_v32, %v670_v2 }
 0x199   :  { %v769_v46 = vmul.f32 %v755_v7, %v743_v43  ;;  %v842_v19 = vmul.f32 %v828_v8, %v816_v51  ;;  %v770_v42 = vmul.f32 %v759_v53, %v741_v48  ;;  %v901_v17 = vrot.slane %v2403_v24, %v3484_v49  ;;  %v3486_v43 = vld [vmem:[#allocation17_spill] sm:$0xff] }
 0x19a   :  { %v832_v34 = vrot.slane %v2412_v28, %v3482_v56  ;;  %v765_v5 = vmul.f32 %v755_v7, %v742_v3  ;;  %v784_v0 = vmul.f32 %v3483_v14, %v768_v33  ;;  %v744_v27 = vsel %vm739_vm4, %v2953_v35, %v2943_v10 }
 0x19b   :  { %v3052_v52 = vpop.permute.xlu1 %875  ;;  %v3093_v45 = vpop.permute.xlu0 %948  ;;  %v824_v2 = vrot.slane %v3481_v40, %v3482_v56  ;;  %v888_v24 = vsel %vm885_vm6, %v2955_v62, %v2959_v39  ;;  %v836_v20 = vrot.slane %v3480_v36, %v3482_v56  ;;  %v3110_v11 = vrot.slane %v3480_v36, %v3484_v49 }
 0x19c   :  { %v3114_v58 = vrot.slane %v3481_v40, %v3484_v49  ;;  %v3119_v32 = vadd.f32 %v787_v25, %v2925_v12  ;;  %v785_v18 = vmul.f32 %v3483_v14, %v769_v46  ;;  %v818_v21 = vsel %vm812_vm5, %v3027_v60, %v2935_v54 }
 0x19d   :  { %v3128_v36 = vrot.slane %v2412_v28, %v3484_v49  ;;  %v858_v1 = vmul.f32 %v3485_v55, %v842_v19  ;;  %v786_v40 = vmul.f32 %v3483_v14, %v770_v42  ;;  %v764_v56 = vmul.f32 %v751_v13, %v744_v27 }
 0x19e   :  { %v740_v12 = vsel %vm739_vm4, %v2889_v38, %v2957_v23  ;;  %v781_v51 = vmul.f32 %v3486_v43, %v765_v5  ;;  %v792_v54 = vadd.f32 %v784_v0, %v2931_v61  ;;  %v911_v7 = vmul.f32 %v901_v17, %v888_v24  ;;  %v3487_v5 = vld [vmem:[#allocation21_spill] sm:$0xff] }
 0x19f   :  { %v3085_v9 = vpop.permute.xlu1 %879  ;;  %v746_v28 = vsel %vm739_vm4, %v2957_v23, %v2953_v35  ;;  %v813_v13 = vsel %vm812_vm5, %v2981_v37, %v2949_v26  ;;  %v815_v38 = vsel %vm812_vm5, %v2961_v63, %v2981_v37  ;;  %v841_v33 = vmul.f32 %v824_v2, %v818_v21  ;;  %v3155_v48 = vpop.permute.xlu0 %952 }
 0x1a0   :  { %v814_v61 = vsel %vm812_vm5, %v2945_v22, %v3041_v30  ;;  %v793_v35 = vadd.f32 %v785_v18, %v2937_v31  ;;  %v766_v23 = vmul.f32 %v759_v53, %v740_v12  ;;  %v817_v14 = vsel %vm812_vm5, %v3017_v59, %v2961_v63 }
 0x1a1   :  { %v819_v37 = vsel %vm812_vm5, %v2949_v26, %v3017_v59  ;;  %v794_v25 = vadd.f32 %v786_v40, %v2939_v57  ;;  %v780_v22 = vmul.f32 %v3486_v43, %v764_v56  ;;  %v767_v46 = vmul.f32 %v763_v47, %v746_v28  ;;  %v3488_v40 = vld [vmem:[#allocation18_spill] sm:$0xff] }
 0x1a2   :  { %v820_v31 = vsel %vm812_vm5, %v3041_v30, %v3027_v60  ;;  %v838_v53 = vmul.f32 %v828_v8, %v815_v38  ;;  %v839_v19 = vmul.f32 %v832_v34, %v813_v13  ;;  %v893_v63 = vsel %vm885_vm6, %v3061_v15, %v3043_v4 }
 0x1a3   :  { %v843_v42 = vmul.f32 %v832_v34, %v814_v61  ;;  %v837_v49 = vmul.f32 %v824_v2, %v817_v14  ;;  %v840_v26 = vmul.f32 %v836_v20, %v819_v37  ;;  %v857_v57 = vmul.f32 %v3485_v55, %v841_v33  ;;  %v945_v24 = vpop.permute.xlu0 %944 }
 0x1a4   :  { %v889_v59 = vsel %vm885_vm6, %v3052_v52, %v3085_v9  ;;  %v927_v60 = vmul.f32 %v3487_v5, %v911_v7  ;;  %v782_v30 = vmul.f32 %v3486_v43, %v766_v23  ;;  %v844_v8 = vmul.f32 %v836_v20, %v820_v31 }
 0x1a5   :  { %v866_v0 = vadd.f32 %v858_v1, %v793_v35  ;;  %v788_v27 = vadd.f32 %v780_v22, %v3030_v50  ;;  %v917_v34 = vmul.f32 %v3110_v11, %v893_v63  ;;  %v891_v2 = vsel %vm885_vm6, %v3043_v4, %v3052_v52 }
 0x1a6   :  { %v789_v18 = vadd.f32 %v781_v51, %v3036_v41  ;;  %v783_v21 = vmul.f32 %v3486_v43, %v767_v46  ;;  %v854_v56 = vmul.f32 %v3488_v40, %v838_v53  ;;  %v859_v12 = vmul.f32 %v3485_v55, %v843_v42  ;;  %v1845_v41 = vld [vmem:[%s3397_s1 + $0x28] ss:$0 sm:$0xff] }
 0x1a7   :  { %v915_v20 = vmul.f32 %v901_v17, %v889_v59  ;;  %v855_v1 = vmul.f32 %v3488_v40, %v839_v19  ;;  %v853_v50 = vmul.f32 %v3488_v40, %v837_v49  ;;  %v856_v7 = vmul.f32 %v3488_v40, %v840_v26 }
 0x1a8   :  { %v865_v28 = vadd.f32 %v857_v57, %v792_v54  ;;  %v914_v4 = vmul.f32 %v3114_v58, %v891_v2  ;;  %v962_v52 = vsel %vm958_vm7, %v3093_v45, %v3155_v48  ;;  %v790_v43 = vadd.f32 %v782_v30, %v3033_v16  ;;  %v3489_v54 = vld [vmem:[#allocation20_spill] sm:$0xff]  ;;  %v1847_v57 = vld [vmem:[%s3397_s1 + $0x38] ss:$0 sm:$0xff] }
 0x1a9   :  { %v861_v51 = vadd.f32 %v853_v50, %v788_v27  ;;  %v933_v38 = vmul.f32 %v3489_v54, %v917_v34  ;;  %v860_v33 = vmul.f32 %v3485_v55, %v844_v8  ;;  %v862_v61 = vadd.f32 %v854_v56, %v789_v18  ;;  %v957_v55 = vpop.permute.xlu0 %956 }
 0x1aa   :  { %v867_v35 = vadd.f32 %v859_v12, %v794_v25  ;;  %v887_v23 = vsel %vm885_vm6, %v3085_v9, %v3061_v15  ;;  %v931_v14 = vmul.f32 %v3489_v54, %v915_v20  ;;  %v791_v37 = vadd.f32 %v783_v21, %v3039_v6 }
 0x1ab   :  { %v988_v22 = vmul.f32 %v1845_v41, %v962_v52  ;;  %v964_v16 = vsel %vm958_vm7, %v945_v24, %v3093_v45  ;;  %v930_v46 = vmul.f32 %v3489_v54, %v914_v4  ;;  %v863_v6 = vadd.f32 %v855_v1, %v790_v43 }
 0x1ac   :  { %v3116_v10 = vpop.permute.xlu1 %996  ;;  %v916_v19 = vmul.f32 %v3128_v36, %v887_v23  ;;  %v935_v63 = vadd.f32 %v927_v60, %v862_v61  ;;  %v939_v26 = vadd.f32 %v931_v14, %v866_v0  ;;  %v966_v59 = vsel %vm958_vm7, %v957_v55, %v945_v24 }
 0x1ad   :  { %v864_v0 = vadd.f32 %v856_v7, %v791_v37  ;;  %v868_v27 = vadd.f32 %v860_v33, %v3119_v32  ;;  %v990_v56 = vmul.f32 %v1847_v57, %v966_v59  ;;  %v3493_v59 = vmov 8  }
 0x1ae   :  { %v932_v24 = vmul.f32 %v3489_v54, %v916_v19  ;;  %v1387_v19 = vld [vmem:[%s3400_s11 + $0x20] sm:$0xff] }
 0x1af   :  { %v1006_v4 = vmul.f32 %v3116_v10, %v990_v56  ;;  %v941_v54 = vadd.f32 %v933_v38, %v868_v27  ;;  %v1397_v38 = vld [vmem:[%s3400_s11 + $0x70] sm:$0xff]  ;;  %v2165_v27 = vmov 9   ;;  %v1716_v56 = vld [vmem:[%s3404_s10] sm:$0xff] }
 0x1b0   :  { %v870_v3 = vpop.permute.xlu1 %869 }
 0x1b1   :  { %v890_v17 = vsel %vm885_vm6, %v870_v3, %v2955_v62  ;;  %v1844_v62 = vld [vmem:[%s3397_s1 + $0x20] ss:$0 sm:$0xff]  ;;  %v1014_v29 = vadd.f32 %v1006_v4, %v941_v54 }
 0x1b2   :  { %v910_v25 = vmul.f32 %v3114_v58, %v890_v17  ;;  %v1004_v58 = vmul.f32 %v3116_v10, %v988_v22  ;;  %v987_v42 = vmul.f32 %v1844_v62, %v964_v16 }
 0x1b4   :  { %v882_v47 = vpop.permute.xlu1 %881  ;;  %v1003_v34 = vmul.f32 %v3116_v10, %v987_v42  ;;  %v1012_v21 = vadd.f32 %v1004_v58, %v939_v26  ;;  %v1384_v58 = vld [vmem:[%s3400_s11 + $0x8] sm:$0xff]  ;;  %v1383_v42 = vld [vmem:[%s3400_s11] sm:$0xff]  ;;  %v3490_v26 = vmov 0  }
 0x1b5   :  { %v886_v15 = vsel %vm885_vm6, %v2959_v39, %v882_v47  ;;  %v892_v31 = vsel %vm885_vm6, %v882_v47, %v870_v3  ;;  %v960_v39 = vsel %vm958_vm7, %v3155_v48, %v957_v55  ;;  %v1846_v3 = vld [vmem:[%s3397_s1 + $0x30] ss:$0 sm:$0xff]  ;;  %v926_v47 = vmul.f32 %v3487_v5, %v910_v25  ;;  %v1395_v55 = vld [vmem:[%s3400_s11 + $0x60] sm:$0xff]  ;;  %v1394_v25 = vld [vmem:[%s3400_s11 + $0x58] sm:$0xff] }
 0x1b6   :  { %v912_v49 = vmul.f32 %v3128_v36, %v886_v15  ;;  %v913_v60 = vmul.f32 %v3110_v11, %v892_v31  ;;  %v938_v36 = vadd.f32 %v930_v46, %v865_v28  ;;  %v989_v40 = vmul.f32 %v1846_v3, %v960_v39  ;;  %v1393_v15 = vld [vmem:[%s3400_s11 + $0x50] sm:$0xff]  ;;  %v1391_v46 = vld [vmem:[%s3400_s11 + $0x40] sm:$0xff] }
 0x1b7   :  { %v934_v12 = vadd.f32 %v926_v47, %v861_v51  ;;  %v1389_v31 = vld [vmem:[%s3400_s11 + $0x30] sm:$0xff]  ;;  %v1474_v39 = vld [vmem:[%s3401_s7] sm:$0x1]  ;;  %v3494_v47 = vmov 4  }
 0x1b8   :  { %v947_v13 = vpop.permute.xlu1 %946  ;;  %v928_v11 = vmul.f32 %v3487_v5, %v912_v49  ;;  %v929_v20 = vmul.f32 %v3487_v5, %v913_v60  ;;  %v1005_v32 = vmul.f32 %v3116_v10, %v989_v40  ;;  %v1011_v43 = vadd.f32 %v1003_v34, %v938_v36  ;;  %1489 = vperm.xlu1 %2040, %v1474_v39   ;;  %v1475_v36 = vld [vmem:[%s3403_s9] sm:$0xff]  ;;  %v1476_v40 = vld [vmem:[%s3403_s9 + $0x8] sm:$0xff] }
 0x1b9   :  { %v940_v5 = vadd.f32 %v932_v24, %v867_v35  ;;  %v1398_v35 = vld [vmem:[%s3400_s11 + $0x78] sm:$0xff]  ;;  %v20_v49 = vstv %s3402_s8  ;;  %1502 = vperm.xlu0 %2042, %v1474_v39   ;;  %v2163_v60 = vmov 11   ;;  %v2166_v34 = vmov 10  }
 0x1ba   :  { %v936_v51 = vadd.f32 %v928_v11, %v863_v6  ;;  %v937_v23 = vadd.f32 %v929_v20, %v864_v0  ;;  %1950 = vmatprep.subr.mxu0 %v1398_v35  ;;  %v1390_v6 = vld [vmem:[%s3400_s11 + $0x38] sm:$0xff]  ;;  %21 = vst [vmem:[#allocation2] sm:$0x1] %v20_v49  ;;  %v1717_v0 = vld [vmem:[%s3404_s10 + $0x8] sm:$0xff] }
 0x1bc   :  { %v951_v9 = vpop.permute.xlu1 %950  ;;  %2041 = vset.pattern.permute.xlu1 %v3490_v26 }
 0x1bd   :  { %v961_v53 = vsel %vm958_vm7, %v947_v13, %v951_v9  ;;  %1479 = vperm.xlu1 %2041, %v1474_v39  }
 0x1be   :  { %v984_v45 = vmul.f32 %v1845_v41, %v961_v53  ;;  %v1388_v53 = vld [vmem:[%s3400_s11 + $0x28] sm:$0xff] }
 0x1c0   :  { %v943_v30 = vpop.permute.xlu1 %942  ;;  %v1000_v48 = vmul.f32 %v2979_v44, %v984_v45  ;;  %v1386_v45 = vld [vmem:[%s3400_s11 + $0x18] sm:$0xff] }
 0x1c1   :  { %v963_v8 = vsel %vm958_vm7, %v943_v30, %v947_v13  ;;  %v1680_v24 = vld [vmem:[#allocation2] sm:$0x1] }
 0x1c2   :  { %v983_v2 = vmul.f32 %v1844_v62, %v963_v8  ;;  %v1008_v18 = vadd.f32 %v1000_v48, %v935_v63  ;;  %v1013_v62 = vadd.f32 %v1005_v32, %v940_v5  ;;  %v1385_v63 = vld [vmem:[%s3400_s11 + $0x10] sm:$0xff]  ;;  %v2164_v48 = vmov 14  }
 0x1c3   :  { %v3496_v8 = vmov 7  }
 0x1c4   :  { %v999_v1 = vmul.f32 %v2979_v44, %v983_v2  ;;  %v955_v50 = vpop.permute.xlu1 %954  ;;  %v1016_v7 = vpack.c.bf16 %v1012_v21, %v1008_v18  ;;  %v2167_v2 = vmov 12   ;;  %v2168_v18 = vmov 13  }
 0x1c5   :  { %v959_v28 = vsel %vm958_vm7, %v951_v9, %v955_v50  ;;  %v965_v13 = vsel %vm958_vm7, %v955_v50, %v943_v30  ;;  %v1392_v9 = vld [vmem:[%s3400_s11 + $0x48] sm:$0xff]  ;;  %v3495_v30 = vmov 6   ;;  %v2169_v21 = vmov 15  }
 0x1c6   :  { %v985_v41 = vmul.f32 %v1846_v3, %v959_v28  ;;  %v986_v52 = vmul.f32 %v1847_v57, %v965_v13  ;;  %1319 = vmatprep.mubr.bf16.mxu0 %v1016_v7  ;;  %v1007_v17 = vadd.f32 %v999_v1, %v934_v12  ;;  %v3491_v3 = vmov 5  }
 0x1c7   :  { %2045 = vset.pattern.permute.xlu0 %v3491_v3  ;;  %v3492_v57 = vmov 3  }
 0x1c8   :  { %v1001_v33 = vmul.f32 %v2979_v44, %v985_v41  ;;  %v1015_v61 = vpack.c.bf16 %v1011_v43, %v1007_v17  ;;  %v1002_v14 = vmul.f32 %v2979_v44, %v986_v52  ;;  %v1396_v44 = vld [vmem:[%s3400_s11 + $0x68] sm:$0xff]  ;;  %1541 = vperm.xlu0 %2045, %v1474_v39   ;;  %2043 = vset.pattern.permute.xlu1 %v3492_v57  ;;  %v1088_v50 = vpop.permute.xlu1 %1087  ;;  %v1093_v43 = vpop.permute.xlu0 %1092 }
 0x1c9   :  { %1515 = vperm.xlu1 %2043, %v1474_v39  }
 0x1ca   :  { %1320 = vmatmul.mubr.bf16.vlgmr.msra.gmra.mxu0 %v1015_v61  ;;  %v1010_v37 = vadd.f32 %v1002_v14, %v937_v23  ;;  %v1009_v22 = vadd.f32 %v1001_v33, %v936_v51 }
 0x1cb   :  { %1951 = vmatpush3.msra.mxu0 %v1398_v35 }
 0x1cc   :  { %v1018_v10 = vpack.c.bf16 %v1014_v29, %v1010_v37  ;;  %v1017_v16 = vpack.c.bf16 %v1013_v62, %v1009_v22  ;;  %1952 = vmatprep.subr.mxu0 %v1397_v38  ;;  %2048 = vset.pattern.permute.xlu0 %v3493_v59 }
 0x1cd   :  { %1953 = vmatpush3.msra.mxu0 %v1397_v38  ;;  %1580 = vperm.xlu0 %2048, %v1474_v39  }
 0x1ce   :  { %1360 = vmatprep.mubr.bf16.mxu1 %v1018_v10  ;;  %1954 = vmatprep.subr.mxu0 %v1396_v44 }
 0x1cf   :  { %1361 = vmatmul.mubr.bf16.vlgmr.msra.gmra.mxu1 %v1017_v16  ;;  %1955 = vmatpush3.msra.mxu0 %v1396_v44 }
 0x1d0   :  { %1956 = vmatprep.subr.mxu0 %v1395_v55  ;;  %2044 = vset.pattern.permute.xlu1 %v3494_v47 }
 0x1d1   :  { %1957 = vmatpush3.msra.mxu0 %v1395_v55  ;;  %1528 = vperm.xlu1 %2044, %v1474_v39  }
 0x1d2   :  { %1958 = vmatprep.subr.mxu0 %v1394_v25  ;;  %2051 = vset.pattern.permute.xlu0 %v2163_v60 }
 0x1d3   :  { %1959 = vmatpush3.msra.mxu0 %v1394_v25  ;;  %1616 = vperm.xlu0 %2051, %v1474_v39  }
 0x1d4   :  { %1960 = vmatprep.subr.mxu0 %v1393_v15 }
 0x1d5   :  { %1961 = vmatpush3.msra.mxu0 %v1393_v15  ;;  %2046 = vset.pattern.permute.xlu1 %v3495_v30 }
 0x1d6   :  { %1962 = vmatprep.subr.mxu0 %v1392_v9  ;;  %1554 = vperm.xlu1 %2046, %v1474_v39  }
 0x1d7   :  { %1963 = vmatpush3.msra.mxu0 %v1392_v9  ;;  %2054 = vset.pattern.permute.xlu0 %v2164_v48 }
 0x1d8   :  { %1964 = vmatprep.subr.mxu0 %v1391_v46  ;;  %1655 = vperm.xlu0 %2054, %v1474_v39  }
 0x1d9   :  { %1965 = vmatpush3.msra.mxu0 %v1391_v46 }
 0x1da   :  { %1966 = vmatprep.subr.mxu0 %v1390_v6  ;;  %2047 = vset.pattern.permute.xlu1 %v3496_v8 }
 0x1db   :  { %1967 = vmatpush3.msra.mxu0 %v1390_v6  ;;  %1567 = vperm.xlu1 %2047, %v1474_v39  }
 0x1dc   :  { %1968 = vmatprep.subr.mxu0 %v1389_v31  ;;  %2057 = vset.pattern.permute.xlu0 %v3490_v26 }
 0x1dd   :  { %1969 = vmatpush3.msra.mxu0 %v1389_v31  ;;  %1700 = vperm.xlu0 %2057, %v1475_v36   ;;  %v3497_v31 = vld [vmem:[#allocation5_spill] sm:$0xff] }
 0x1de   :  { %1970 = vmatprep.subr.mxu0 %v1388_v53 }
 0x1df   :  { %1971 = vmatpush3.msra.mxu0 %v1388_v53  ;;  %2049 = vset.pattern.permute.xlu1 %v2165_v27 }
 0x1e0   :  { %1972 = vmatprep.subr.mxu0 %v1387_v19  ;;  %1590 = vperm.xlu1 %2049, %v1474_v39  }
 0x1e1   :  { %1973 = vmatpush3.msra.mxu0 %v1387_v19  ;;  %1725 = vperm.xlu0 %2057, %v1717_v0  }
 0x1e2   :  { %1974 = vmatprep.subr.mxu0 %v1386_v45 }
 0x1e3   :  { %1975 = vmatpush3.msra.mxu0 %v1386_v45 }
 0x1e4   :  { %1976 = vmatprep.subr.mxu0 %v1385_v63  ;;  %2050 = vset.pattern.permute.xlu1 %v2166_v34 }
 0x1e5   :  { %1977 = vmatpush3.msra.mxu0 %v1385_v63  ;;  %1603 = vperm.xlu1 %2050, %v1474_v39  }
 0x1e6   :  { %1978 = vmatprep.subr.mxu0 %v1384_v58 }
 0x1e7   :  { %1979 = vmatpush3.msra.mxu0 %v1384_v58 }
 0x1e8   :  { %1980 = vmatprep.subr.mxu0 %v1383_v42 }
 0x1e9   :  { %1981 = vmatpush3.msra.mxu0 %v1383_v42  ;;  %2052 = vset.pattern.permute.xlu1 %v2167_v2 }
 0x1ea   :  { %1629 = vperm.xlu1 %2052, %v1474_v39  }
 0x1ee   :  { %2053 = vset.pattern.permute.xlu1 %v2168_v18 }
 0x1ef   :  { %1642 = vperm.xlu1 %2053, %v1474_v39  }
 0x1f3   :  { %2055 = vset.pattern.permute.xlu1 %v2169_v21 }
 0x1f4   :  { %1668 = vperm.xlu1 %2055, %v1474_v39  }
 0x1f8   :  { %2056 = vset.pattern.permute.xlu1 %v3490_v26 }
 0x1f9   :  { %1683 = vperm.xlu1 %2056, %v1680_v24  }
 0x1fd   :  { %1705 = vperm.xlu1 %2056, %v1476_v40  }
 0x201   :  { %1720 = vperm.xlu1 %2056, %v1716_v56  }
 0x233   :  { %v1490_v38 = vpop.permute.xlu1 %1489 }
 0x234   :  { %v1503_v46 = vpop.permute.xlu0 %1502  ;;  %v1495_v45 = vrot.slane %v1490_v38, %v3497_v31 }
 0x235   :  { %v1508_v53 = vrot.slane %v1503_v46, %v3497_v31 }
 0x238   :  { %v1480_v44 = vpop.permute.xlu1 %1479 }
 0x239   :  { %v1485_v42 = vrot.slane %v1480_v44, %v3497_v31 }
 0x243   :  { %v1542_v63 = vpop.permute.xlu0 %1541 }
 0x244   :  { %v1516_v55 = vpop.permute.xlu1 %1515  ;;  %v1547_v57 = vrot.slane %v1542_v63, %v3497_v31 }
 0x245   :  { %v1521_v39 = vrot.slane %v1516_v55, %v3497_v31 }
 0x248   :  { %v1581_v34 = vpop.permute.xlu0 %1580 }
 0x24c   :  { %v1529_v25 = vpop.permute.xlu1 %1528 }
 0x24d   :  { %v1534_v47 = vrot.slane %v1529_v25, %v3497_v31 }
 0x251   :  { %v1555_v15 = vpop.permute.xlu1 %1554 }
 0x252   :  { %v1560_v27 = vrot.slane %v1555_v15, %v3497_v31 }
 0x256   :  { %v1568_v9 = vpop.permute.xlu1 %1567 }
 0x257   :  { %v1573_v2 = vrot.slane %v1568_v9, %v3497_v31 }
 0x25b   :  { %v1591_v6 = vpop.permute.xlu1 %1590 }
 0x260   :  { %v1604_v59 = vpop.permute.xlu1 %1603 }
 0x265   :  { %v1630_v40 = vpop.permute.xlu1 %1629 }
 0x28a   :  { %v1902_v11 = vpop.f32.mrf.mxu0 }
 0x28c   :  { %v1903_v12 = vpop.f32.mrf.mxu0 }
 0x28d   :  { %v1904_v20 = vadd.f32 %v1903_v12, %v1902_v11 }
 0x28e   :  { %v1905_v1 = vpop.f32.mrf.mxu0 }
 0x28f   :  { %v1924_v7 = vpop.f32.mrf.mxu1  ;;  %v1322_v13 = vadd.f32 %v1904_v20, %v1088_v50  ;;  %v1596_v20 = vrot.slane %v1591_v6, %v3497_v31 }
 0x290   :  { %v1906_v32 = vpop.f32.mrf.mxu0 }
 0x291   :  { %v1925_v28 = vpop.f32.mrf.mxu1  ;;  %v1907_v4 = vadd.f32 %v1906_v32, %v1905_v1  ;;  %v1617_v32 = vpop.permute.xlu0 %1616 }
 0x292   :  { %v1926_v41 = vadd.f32 %v1925_v28, %v1924_v7  ;;  %v1609_v28 = vrot.slane %v1604_v59, %v3497_v31 }
 0x293   :  { %v1927_v52 = vpop.f32.mrf.mxu1  ;;  %v1325_v51 = vadd.f32 %v1907_v4, %v1093_v43 }
 0x294   :  { %v1363_v17 = vadd.f32 %v1926_v41, %v1322_v13  ;;  %v1586_v13 = vrot.slane %v1581_v34, %v3497_v31 }
 0x295   :  { %v1928_v5 = vpop.f32.mrf.mxu1 }
 0x296   :  { %v1880_v54 = vmul.f32 -1.442695, %v1363_v17  ;;  %v1929_v33 = vadd.f32 %v1928_v5, %v1927_v52  ;;  %v1643_v52 = vpop.permute.xlu1 %1642 }
 0x298   :  { %2126 = vpow2.f32 %v1880_v54  ;;  %v1366_v61 = vadd.f32 %v1929_v33, %v1325_v51  ;;  %v1635_v54 = vrot.slane %v1630_v40, %v3497_v31 }
 0x29a   :  { %v1881_v23 = vmul.f32 -1.442695, %v1366_v61 }
 0x29c   :  { %2128 = vpow2.f32 %v1881_v23 }
 0x2a5   :  { %v2127_v14 = vpop.eup %2126 }
 0x2a6   :  { %v1375_v37 = vadd.f32 1.0, %v2127_v14  ;;  %v1656_v14 = vpop.permute.xlu0 %1655 }
 0x2a7   :  { %v1661_v38 = vrot.slane %v1656_v14, %v3497_v31 }
 0x2a8   :  { %2130 = vrcp.f32 %v1375_v37  ;;  %v1648_v37 = vrot.slane %v1643_v52, %v3497_v31  ;;  %v2170_v52 = vmov 0.0  }
 0x2a9   :  { %v2129_v29 = vpop.eup %2128  ;;  %1985 = vmatprep.subr.bf16.mxu1 %v2170_v52  ;;  %1987 = vmatprep.mubr.msk.bf16.mxu1 %vm2171_vm8, %v2170_v52 }
 0x2aa   :  { %v1376_v22 = vadd.f32 1.0, %v2129_v29 }
 0x2ac   :  { %2132 = vrcp.f32 %v1376_v22 }
 0x2b5   :  { %v2131_v62 = vpop.eup %2130 }
 0x2b6   :  { %v3339_v10 = vmul.f32 %v2131_v62, %v1363_v17  ;;  %v1622_v17 = vrot.slane %v1617_v32, %v3497_v31 }
 0x2b8   :  { %1982 = vmatprep.mubr.f32.mxu0 %v3339_v10 }
 0x2b9   :  { %v2133_v16 = vpop.eup %2132 }
 0x2ba   :  { %v3342_v35 = vmul.f32 %v2133_v16, %v1366_v61  ;;  %v1669_v16 = vpop.permute.xlu1 %1668 }
 0x2bb   :  { %v1674_v15 = vrot.slane %v1669_v16, %v3497_v31 }
 0x2bc   :  { %1983 = vmatmul.mubr.f32.vlgmr.msra.gmra.mxu0 %v3342_v35 }
 0x37c   :  { %v3346_v19 = vpop.f32.mrf.mxu0 }
 0x37d   :  { %v1597_v51 = vmul.f32 %v3346_v19, %v1596_v20  ;;  %v1587_v33 = vmul.f32 %v3346_v19, %v1586_v13  ;;  %v1610_v23 = vmul.f32 %v3346_v19, %v1609_v28  ;;  %v1623_v62 = vmul.f32 %v3346_v19, %v1622_v17  ;;  %v1781_v17 = vld [vmem:[%s3405_s14] sm:$0xff] }
 0x37e   :  { %v1465_v58 = vpop.f32.mrf.mxu0  ;;  %v1636_v25 = vmul.f32 %v3346_v19, %v1635_v54  ;;  %v1649_v6 = vmul.f32 %v3346_v19, %v1648_v37  ;;  %v1662_v63 = vmul.f32 %v3346_v19, %v1661_v38 }
 0x37f   :  { %v1496_v49 = vmul.f32 %v1495_v45, %v1465_v58  ;;  %v1509_v3 = vmul.f32 %v1508_v53, %v1465_v58  ;;  %v1486_v60 = vmul.f32 %v1485_v42, %v1465_v58  ;;  %v1522_v48 = vmul.f32 %v1521_v39, %v1465_v58 }
 0x380   :  { %v1535_v0 = vmul.f32 %v1534_v47, %v1465_v58  ;;  %v1548_v24 = vmul.f32 %v1547_v57, %v1465_v58  ;;  %v1561_v12 = vmul.f32 %v1560_v27, %v1465_v58  ;;  %v1574_v7 = vmul.f32 %v1573_v2, %v1465_v58  ;;  %v1684_v57 = vpop.permute.xlu1 %1683  ;;  %v1701_v2 = vpop.permute.xlu0 %1700 }
 0x381   :  { %v1498_v30 = vrot.slane %v1496_v49, 1  ;;  %v1511_v8 = vrot.slane %v1509_v3, 2  ;;  %v1524_v21 = vrot.slane %v1522_v48, 3  ;;  %v1599_v22 = vrot.slane %v1597_v51, 1 }
 0x382   :  { %v1537_v11 = vrot.slane %v1535_v0, 4  ;;  %v1550_v50 = vrot.slane %v1548_v24, 5  ;;  %v1563_v41 = vrot.slane %v1561_v12, 6  ;;  %v1576_v5 = vrot.slane %v1574_v7, 7 }
 0x383   :  { %v1500_v36 = vadd.f32 %v1498_v30, %v1486_v60  ;;  %v1612_v55 = vrot.slane %v1610_v23, 2  ;;  %v1625_v46 = vrot.slane %v1623_v62, 3  ;;  %v1638_v45 = vrot.slane %v1636_v25, 4 }
 0x384   :  { %v1651_v42 = vrot.slane %v1649_v6, 5  ;;  %v1675_v39 = vmul.f32 %v3346_v19, %v1674_v15  ;;  %v1664_v3 = vrot.slane %v1662_v63, 6  ;;  %v1689_v60 = vrot.slane %v1684_v57, %v3497_v31  ;;  %v1706_v34 = vpop.permute.xlu1 %1705 }
 0x385   :  { %v1513_v18 = vadd.f32 %v1511_v8, %v1500_v36 }
 0x386   :  { %v1677_v47 = vrot.slane %v1675_v39, 7 }
 0x387   :  { %v1526_v56 = vadd.f32 %v1524_v21, %v1513_v18 }
 0x388   :  { %v1721_v40 = vpop.permute.xlu1 %1720 }
 0x389   :  { %v1539_v1 = vadd.f32 %v1537_v11, %v1526_v56  ;;  %v1726_v56 = vpop.permute.xlu0 %1725 }
 0x38b   :  { %v1552_v4 = vadd.f32 %v1550_v50, %v1539_v1 }
 0x38d   :  { %v1565_v43 = vadd.f32 %v1563_v41, %v1552_v4  ;;  %v3498_v41 = vmov 1  }
 0x38f   :  { %v1578_v61 = vadd.f32 %v1576_v5, %v1565_v43  ;;  %v1742_v43 = vld [vmem:[%s3406_s12] sm:$0x3] }
 0x390   :  { %v1756_v54 = vrot.slane %v1742_v43, %v3497_v31 }
 0x391   :  { %v1588_v29 = vadd.f32 %v1587_v33, %v1578_v61  ;;  %v3499_v33 = vld [vmem:[#allocation3_spill] sm:$0xff] }
 0x392   :  { %v1772_v61 = vrot.slane %v1742_v43, %v3499_v33 }
 0x393   :  { %v1601_v44 = vadd.f32 %v1599_v22, %v1588_v29 }
 0x395   :  { %v1614_v9 = vadd.f32 %v1612_v55, %v1601_v44 }
 0x397   :  { %v1627_v53 = vadd.f32 %v1625_v46, %v1614_v9 }
 0x399   :  { %v1640_v58 = vadd.f32 %v1638_v45, %v1627_v53 }
 0x39b   :  { %v1653_v49 = vadd.f32 %v1651_v42, %v1640_v58 }
 0x39d   :  { %v1666_v59 = vadd.f32 %v1664_v3, %v1653_v49 }
 0x39f   :  { %v1679_v30 = vadd.f32 %v1677_v47, %v1666_v59 }
 0x3a1   :  { %v1690_v48 = vadd.f32 %v1689_v60, %v1679_v30 }
 0x3a3   :  { %v1882_v36 = vmul.f32 -1.442695, %v1690_v48 }
 0x3a5   :  { %2134 = vpow2.f32 %v1882_v36 }
 0x3b2   :  { %v2135_v8 = vpop.eup %2134 }
 0x3b3   :  { %v1694_v0 = vadd.f32 1.0, %v2135_v8 }
 0x3b5   :  { %2136 = vrcp.f32 %v1694_v0 }
 0x3c2   :  { %v2137_v27 = vpop.eup %2136 }
 0x3c3   :  { %v1697_v18 = vmul.f32 %v2137_v27, %v1690_v48 }
 0x3c5   :  { %v1711_v19 = vrot.slane %v1697_v18, %v3497_v31  ;;  %v1779_v31 = vld [vmem:[%s3407_s13] sm:$0xf] }
 0x3c7   :  { %v1713_v21 = vmul.f32 %v1711_v19, %v1706_v34  ;;  %v1712_v24 = vmul.f32 %v1711_v19, %v1701_v2 }
 0x3c9   :  { %v1728_v11 = vadd.f32 %v1721_v40, %v1712_v24  ;;  %v1729_v12 = vadd.f32 %v1726_v56, %v1713_v21 }
 0x3cb   :  { %v1883_v20 = vmul.f32 -1.442695, %v1728_v11  ;;  %v1884_v1 = vmul.f32 -1.442695, %v1729_v12 }
 0x3cd   :  { %2138 = vpow2.f32 %v1883_v20 }
 0x3ce   :  { %2140 = vpow2.f32 %v1884_v1 }
 0x3da   :  { %v2139_v50 = vpop.eup %2138 }
 0x3db   :  { %v2141_v7 = vpop.eup %2140  ;;  %v1736_v32 = vadd.f32 1.0, %v2139_v50 }
 0x3dc   :  { %v1737_v28 = vadd.f32 1.0, %v2141_v7 }
 0x3dd   :  { %2142 = vrcp.f32 %v1736_v32 }
 0x3de   :  { %2144 = vrcp.f32 %v1737_v28 }
 0x3ea   :  { %v2143_v13 = vpop.eup %2142 }
 0x3eb   :  { %v2145_v4 = vpop.eup %2144  ;;  %1745 = vperm.xlu1 %2056, %v2143_v13  }
 0x3ec   :  { %1750 = vperm.xlu0 %2057, %v2145_v4  }
 0x3ef   :  { %2058 = vset.pattern.permute.xlu1 %v3498_v41 }
 0x3f0   :  { %2059 = vset.pattern.permute.xlu0 %v3498_v41  ;;  %1762 = vperm.xlu1 %2058, %v2143_v13  }
 0x3f1   :  { %1766 = vperm.xlu0 %2059, %v2145_v4  }
 0x3f4   :  { %2060 = vset.pattern.permute.xlu1 %v3490_v26 }
 0x3f5   :  { %2061 = vset.pattern.permute.xlu0 %v3490_v26  ;;  %1784 = vperm.xlu1 %2060, %v1781_v17  }
 0x466   :  { %v1746_v5 = vpop.permute.xlu1 %1745 }
 0x467   :  { %v1751_v51 = vpop.permute.xlu0 %1750  ;;  %v1757_v14 = vmul.f32 %v1756_v54, %v1746_v5 }
 0x468   :  { %v1758_v29 = vmul.f32 %v1756_v54, %v1751_v51 }
 0x46b   :  { %v1763_v23 = vpop.permute.xlu1 %1762 }
 0x46c   :  { %v1767_v26 = vpop.permute.xlu0 %1766  ;;  %v1773_v37 = vmul.f32 %v1772_v61, %v1763_v23 }
 0x46d   :  { %v1774_v22 = vmul.f32 %v1772_v61, %v1767_v26 }
 0x46e   :  { %v1775_v62 = vadd.f32 %v1773_v37, %v1757_v14 }
 0x46f   :  { %v1776_v16 = vadd.f32 %v1774_v22, %v1758_v29 }
 0x470   :  { %v1777_v38 = vmul.f32 %v1775_v62, %v3339_v10  ;;  %v1785_v25 = vpop.permute.xlu1 %1784 }
 0x471   :  { %v1778_v44 = vmul.f32 %v1776_v16, %v3342_v35 }
 0x473   :  { %v1780_v55 = vpack.c.bf16 %v1778_v44, %v1777_v38 }
 0x475   :  { %1986 = vmatpush3.bf16.msra.mxu1 %v1780_v55 }
 0x478   :  { %1988 = vmatmul.mubr.msk.bf16.vlgmr.msra.gmra.mxu1 %vm1787_vm9, %v1779_v31 }
 0x538   :  { %v1825_v15 = vpop.f32.mrf.mxu1 }
 0x539   :  { %v1826_v9 = vadd.f32 %v1825_v15, %v1785_v25 }
 0x53a   :  { %v1989_v46 = vpop.f32.mrf.mxu1 }
 0x53b   :  { %1831 = vst [vmem:[%s3408_s15] sm:$0xff] %v1826_v9 }
 0x53c   :  { %v1828_v6 = vpop.f32.mrf.mxu1 }
 0x53e   :  { %v1990_v10 = vpop.f32.mrf.mxu1 }

</bundles_post_ra>
